<compile_context>
chip_gen: v7x
topology: tpu7x:2x2x1
jax: 0.10.0
libtpu: 0.0.40
codegen_flags: <defaults>
</compile_context>

<pallas_src>
import jax
import jax.numpy as jnp
from jax.experimental import pallas as pl
from jax.experimental.pallas import tpu as pltpu

SIM_GW = 0.5      # unused in forward (the reference returns only loss_g)
T_GLOBAL = 0.07


def _min_sublane(itemsize: int) -> int:
    return {4: 8, 2: 16, 1: 32}.get(itemsize, 8)


def _vmem_capacity_bytes() -> int:
    """Physical VMEM per TensorCore; falls back to the v7x-safe 64 MiB."""
    try:
        return int(pltpu.get_tpu_info().vmem_capacity_bytes)
    except Exception:
        return 64 << 20


def _pick_block_rows(n: int, itemsize: int, max_rows: int) -> int:
    """Largest row tile that divides n, respects (8,128) tiling and the budget."""
    sub = _min_sublane(itemsize)
    preferred = (1024, 512, 256, 128)
    # First pass: prefer an even tile count (lets v7x split rows across both TCs).
    for tm in preferred:
        if tm <= max_rows and tm <= n and n % tm == 0 and (n // tm) % 2 == 0:
            return tm
    for tm in preferred:
        if tm <= max_rows and tm <= n and n % tm == 0:
            return tm
    best = None
    t = sub
    limit = min(n, max_rows)
    while t <= limit:
        if n % t == 0:
            best = t
        t += sub
    # TODO(synk): N with no suitable divisor (e.g. 8 * large prime) degrades to
    # tiny tiles or one full-matrix tile; a masked tail-tile path would fix that.
    return best if best is not None else n


def _make_kernel(tm: int, n: int, inv_t: float, tiles_per_core: int):
    inv_t = float(inv_t)

    def kernel(sim_ref, parts_ref, cmax_ref, csum_ref, gmax_ref, acc_ref):
        c = pl.program_id(0)                 # core split (parallel)
        i = pl.program_id(1)                 # row tiles handled by this core
        nt = pl.num_programs(1)
        row_block = c * tiles_per_core + i   # global row-tile index

        @pl.when(i == 0)
        def _init():
            gmax_ref[...] = jnp.full_like(gmax_ref, -jnp.inf)
            csum_ref[...] = jnp.zeros_like(csum_ref)
            acc_ref[...] = jnp.zeros_like(acc_ref)

        # One upcast + scale pass over the tile: st = sim / t.
        st = sim_ref[...].astype(jnp.float32) * inv_t                        # (tm, n)

        # Diagonal band of this row tile, read from the resident tile
        # (no duplicate HBM stream).
        gi = row_block * tm + jax.lax.broadcasted_iota(jnp.int32, (tm, 1), 0)
        jj = jax.lax.broadcasted_iota(jnp.int32, (tm, n), 1)
        diag = jnp.sum(jnp.where(jj == gi, st, 0.0), axis=1, keepdims=True)  # (tm, 1)

        # Shared running scalar max for BOTH row and column statistics.
        old_g = gmax_ref[...]                                                # (1, 1)
        tile_max = jnp.max(jnp.max(st, axis=1, keepdims=True),
                           axis=0, keepdims=True)                            # (1, 1)
        new_g = jnp.maximum(old_g, tile_max)

        # Single EUP exponential pass feeds both reductions.
        e = jnp.exp(st - new_g)                                              # (tm, n)

        # Row logsumexp (exact f32 sums; each row lives in exactly one tile).
        row_lse = new_g + jnp.log(jnp.sum(e, axis=1, keepdims=True))         # (tm, 1)

        # Online column sum-exp w.r.t. the running scalar max.
        csum_ref[0] = csum_ref[0] * jnp.exp(old_g - new_g) \
            + jnp.sum(e, axis=0, keepdims=True)
        gmax_ref[...] = new_g

        # Per-row partials of the fused objective; reduced once at finalize
        # (no per-step scalar SMEM RMW / XLU tree reduce).
        acc_ref[...] += row_lse - 2.0 * diag

        @pl.when(i == nt - 1)
        def _finalize():
            parts_ref[0] = jnp.full((1, 128), jnp.sum(acc_ref[...]),
                                    dtype=jnp.float32)
            cmax_ref[0] = jnp.broadcast_to(new_g, (1, 128))

    return kernel


def contrastive_loss(sim_g, sim_v=None, sim_t=None, *,
                     t_global=T_GLOBAL, block_rows=None):
    """Pallas TPU implementation of ContrastiveLoss.forward (returns loss_g).

    sim_v / sim_t are accepted but unused, exactly like the reference forward.
    """
    del sim_v, sim_t
    n, m = sim_g.shape
    assert n == m, "contrastive loss expects a square similarity matrix"
    itemsize = jnp.dtype(sim_g.dtype).itemsize
    sub = _min_sublane(itemsize)
    inv_t = 1.0 / float(t_global)

    # --- VMEM-capacity-aware tile sizing (accounts for f32 intermediates) ---
    cap = _vmem_capacity_bytes()
    limit_cap = min((3 * cap) // 4, 96 << 20)        # ~48 MiB on v7x, 96 MiB on v5e/v6e
    # Per-row VMEM cost: double-buffered native tile + ~3 live (TM, N) f32
    # intermediates (scaled tile, exp tile, band-mask temporaries).
    row_cost = n * (2 * itemsize + 3 * 4)
    fixed = 2 * 8 * n * 4 + (2 << 20)                # column accumulators + misc
    max_rows = max(sub, (limit_cap - fixed - (4 << 20)) // row_cost)

    if block_rows is not None:
        tm = int(block_rows)
        assert n % tm == 0, "block_rows must divide N"
        assert tm == n or tm % sub == 0, "block_rows must respect the min sublane tile"
    else:
        tm = _pick_block_rows(n, itemsize, max_rows)

    num_tiles = n // tm
    n_cores = 2 if (num_tiles % 2 == 0 and num_tiles >= 2) else 1
    tiles_per_core = num_tiles // n_cores

    kernel = _make_kernel(tm, n, inv_t, tiles_per_core)

    needed = 2 * tm * n * itemsize + 3 * tm * n * 4 + fixed + tm * 128 * 4
    vmem_limit = int(min(cap - (8 << 20), max(needed + (8 << 20), 32 << 20)))

    grid_spec = pltpu.PrefetchScalarGridSpec(
        num_scalar_prefetch=0,
        grid=(n_cores, tiles_per_core),
        in_specs=[pl.BlockSpec((tm, n), lambda c, i: (c * tiles_per_core + i, 0))],
        out_specs=(
            pl.BlockSpec((1, 1, 128), lambda c, i: (c, 0, 0)),   # per-core row partial
            pl.BlockSpec((1, 1, 128), lambda c, i: (c, 0, 0)),   # per-core running max
            pl.BlockSpec((1, 1, n), lambda c, i: (c, 0, 0)),     # per-core col sum-exp
        ),
        scratch_shapes=[
            pltpu.VMEM((1, 1), jnp.float32),    # running scalar max of S (scaled)
            pltpu.VMEM((tm, 1), jnp.float32),   # per-row partials: LSE_row - 2*S_ii
        ],
    )

    parts, cmax, csum = pl.pallas_call(
        kernel,
        out_shape=(
            jax.ShapeDtypeStruct((n_cores, 1, 128), jnp.float32),
            jax.ShapeDtypeStruct((n_cores, 1, 128), jnp.float32),
            jax.ShapeDtypeStruct((n_cores, 1, n), jnp.float32),
        ),
        grid_spec=grid_spec,
        compiler_params=pltpu.CompilerParams(
            dimension_semantics=("parallel", "arbitrary"),
            vmem_limit_bytes=vmem_limit,
        ),
    )(sim_g)

    # Tiny cross-core logsumexp merge in plain JAX (O(n_cores * N)).
    parts = parts[:, 0, 0]          # (C,)  sum_i (LSE_row_i - 2 * S_ii) per core
    cmax = cmax[:, 0, 0]            # (C,)  per-core running max (scaled)
    csum = csum[:, 0, :]            # (C, N) per-core column sum-exp
    g = jnp.max(cmax)
    col_lse = g + jnp.log(jnp.sum(jnp.exp(cmax - g)[:, None] * csum, axis=0))  # (N,)
    total = jnp.sum(parts) + jnp.sum(col_lse)
    return total / (2.0 * n)


def _reference_loss(sim_g, t_global=T_GLOBAL):
    # Pure-JAX reference (mirrors nn.CrossEntropyLoss with mean reduction).
    s = sim_g.astype(jnp.float32) / t_global
    n = s.shape[0]
    labels = jnp.arange(n)

    def ce(logits):
        lse = jax.nn.logsumexp(logits, axis=1)
        picked = logits[jnp.arange(n), labels]
        return jnp.mean(lse - picked)

    return (ce(s) + ce(s.T)) / 2.0


if __name__ == "__main__":
    key = jax.random.PRNGKey(0)
    k1, k2, k3, k4, k5 = jax.random.split(key, 5)

    # Case 1: 256x256 f32, two row tiles -> dual-core split path (grid (2, 1)).
    n1 = 256
    sim_g1 = jax.random.uniform(k1, (n1, n1), jnp.float32, minval=-1.0, maxval=1.0)
    sim_v = jax.random.normal(k2, (n1, 32), jnp.float32)   # unused, as in the reference
    sim_t = jax.random.normal(k3, (n1, 32), jnp.float32)   # unused, as in the reference
    out1 = jax.block_until_ready(contrastive_loss(sim_g1, sim_v, sim_t, block_rows=128))
    ref1 = _reference_loss(sim_g1)
    assert jnp.allclose(out1, ref1, rtol=1e-4, atol=1e-4), (out1, ref1)

    # Case 2: bf16 input streamed in its native dtype (half the HBM bytes),
    # automatic tile selection.
    sim_g2 = jax.random.uniform(k4, (n1, n1), jnp.float32,
                                minval=-1.0, maxval=1.0).astype(jnp.bfloat16)
    out2 = jax.block_until_ready(contrastive_loss(sim_g2))
    ref2 = _reference_loss(sim_g2)
    assert jnp.allclose(out2, ref2, rtol=1e-4, atol=1e-4), (out2, ref2)

    # Case 3: small non-128 shape, odd tile count -> single-core grid (1, 3).
    n3 = 48
    sim_g3 = jax.random.uniform(k5, (n3, n3), jnp.float32, minval=-1.0, maxval=1.0)
    out3 = jax.block_until_ready(contrastive_loss(sim_g3, block_rows=16))
    ref3 = _reference_loss(sim_g3)
    assert jnp.allclose(out3, ref3, rtol=1e-4, atol=1e-4), (out3, ref3)

    print("KERNEL_OK")
</pallas_src>

<mosaic_0001>
module attributes {stable_mosaic.version = 11 : i64} {
  func.func @kernel(%arg0: i32, %arg1: i32, %arg2: memref<128x256xf32, #tpu.memory_space<vmem>>, %arg3: memref<1x1x128xf32, #tpu.memory_space<vmem>>, %arg4: memref<1x1x128xf32, #tpu.memory_space<vmem>>, %arg5: memref<1x1x256xf32, #tpu.memory_space<vmem>>, %arg6: memref<1x1xf32, #tpu.memory_space<vmem>>, %arg7: memref<128x1xf32, #tpu.memory_space<vmem>>) attributes {dimension_semantics = [#tpu.dimension_semantics<parallel>, #tpu.dimension_semantics<arbitrary>], iteration_bounds = array<i64: 2, 1>, scalar_prefetch = 0 : i64, scratch_operands = 2 : i64, tpu.core_type = #tpu.core_type<tc>, window_params = [{transform_indices = @transform_0, window_bounds = array<i64: 128, 256>}, {transform_indices = @transform_1, window_bounds = array<i64: 1, 1, 128>}, {transform_indices = @transform_2, window_bounds = array<i64: 1, 1, 128>}, {transform_indices = @transform_3, window_bounds = array<i64: 1, 1, 256>}]} {
    %c1_i32 = arith.constant 1 : i32
    %0 = arith.muli %arg0, %c1_i32 : i32
    %1 = arith.addi %0, %arg1 : i32
    %c0_i32 = arith.constant 0 : i32
    %2 = arith.cmpi eq, %arg1, %c0_i32 : i32
    %3 = arith.extui %2 : i1 to i32
    %c0_i32_0 = arith.constant 0 : i32
    %4 = arith.cmpi ne, %3, %c0_i32_0 : i32
    scf.if %4 {
      %cst_25 = arith.constant 0xFF800000 : f32
      %55 = vector.broadcast %cst_25 : f32 to vector<1x1xf32>
      %c0_26 = arith.constant 0 : index
      %c0_27 = arith.constant 0 : index
      %56 = vector.load %arg6[%c0_26, %c0_27] : memref<1x1xf32, #tpu.memory_space<vmem>>, vector<1x1xf32>
      tpu.vector_store %arg6[%c0_26, %c0_27], %55 {strides = array<i32>} : memref<1x1xf32, #tpu.memory_space<vmem>>, vector<1x1xf32>,
      %cst_28 = arith.constant 0.000000e+00 : f32
      %57 = vector.broadcast %cst_28 : f32 to vector<1x1x256xf32>
      %c0_29 = arith.constant 0 : index
      %c0_30 = arith.constant 0 : index
      %c0_31 = arith.constant 0 : index
      %58 = vector.load %arg5[%c0_29, %c0_30, %c0_31] : memref<1x1x256xf32, #tpu.memory_space<vmem>>, vector<1x1x256xf32>
      tpu.vector_store %arg5[%c0_29, %c0_30, %c0_31], %57 {strides = array<i32>} : memref<1x1x256xf32, #tpu.memory_space<vmem>>, vector<1x1x256xf32>,
      %cst_32 = arith.constant 0.000000e+00 : f32
      %59 = vector.broadcast %cst_32 : f32 to vector<128x1xf32>
      %c0_33 = arith.constant 0 : index
      %c0_34 = arith.constant 0 : index
      %60 = vector.load %arg7[%c0_33, %c0_34] : memref<128x1xf32, #tpu.memory_space<vmem>>, vector<128x1xf32>
      tpu.vector_store %arg7[%c0_33, %c0_34], %59 {strides = array<i32>} : memref<128x1xf32, #tpu.memory_space<vmem>>, vector<128x1xf32>,
    } else {
    }
    %c0 = arith.constant 0 : index
    %c0_1 = arith.constant 0 : index
    %5 = vector.load %arg2[%c0, %c0_1] : memref<128x256xf32, #tpu.memory_space<vmem>>, vector<128x256xf32>
    %cst = arith.constant 14.2857141 : f32
    %6 = vector.broadcast %cst : f32 to vector<128x256xf32>
    %7 = arith.mulf %5, %6 : vector<128x256xf32>
    %c128_i32 = arith.constant 128 : i32
    %8 = arith.muli %1, %c128_i32 : i32
    %9 = tpu.iota {dimensions = array<i32: 0>} : vector<128x1xi32>
    %10 = vector.broadcast %8 : i32 to vector<128x1xi32>
    %11 = arith.addi %10, %9 : vector<128x1xi32>
    %12 = tpu.iota {dimensions = array<i32: 1>} : vector<128x256xi32>
    %13 = vector.broadcast %11 : vector<128x1xi32> to vector<128x256xi32>
    %14 = arith.cmpi eq, %12, %13 : vector<128x256xi32>
    %cst_2 = arith.constant 0.000000e+00 : f32
    %15 = vector.broadcast %cst_2 : f32 to vector<128x256xf32>
    %16 = arith.select %14, %7, %15 : vector<128x256xi1>, vector<128x256xf32>
    %cst_3 = arith.constant dense<0.000000e+00> : vector<128xf32>
    %17 = vector.multi_reduction <add>, %16, %cst_3 [1] : vector<128x256xf32> to vector<128xf32>
    %18 = vector.shape_cast %17 : vector<128xf32> to vector<128x1xf32>
    %c0_4 = arith.constant 0 : index
    %c0_5 = arith.constant 0 : index
    %19 = vector.load %arg6[%c0_4, %c0_5] : memref<1x1xf32, #tpu.memory_space<vmem>>, vector<1x1xf32>
    %cst_6 = arith.constant dense<0xFF800000> : vector<128xf32>
    %20 = vector.multi_reduction <maximumf>, %7, %cst_6 [1] : vector<128x256xf32> to vector<128xf32>
    %21 = vector.shape_cast %20 : vector<128xf32> to vector<128x1xf32>
    %cst_7 = arith.constant dense<0xFF800000> : vector<1xf32>
    %22 = vector.multi_reduction <maximumf>, %21, %cst_7 [0] : vector<128x1xf32> to vector<1xf32>
    %23 = vector.shape_cast %22 : vector<1xf32> to vector<1x1xf32>
    %24 = arith.maximumf %19, %23 : vector<1x1xf32>
    %25 = vector.broadcast %24 : vector<1x1xf32> to vector<128x256xf32>
    %26 = arith.subf %7, %25 : vector<128x256xf32>
    %27 = math.exp %26 : vector<128x256xf32>
    %cst_8 = arith.constant dense<0.000000e+00> : vector<128xf32>
    %28 = vector.multi_reduction <add>, %27, %cst_8 [1] : vector<128x256xf32> to vector<128xf32>
    %29 = vector.shape_cast %28 : vector<128xf32> to vector<128x1xf32>
    %30 = math.log %29 : vector<128x1xf32>
    %31 = vector.broadcast %24 : vector<1x1xf32> to vector<128x1xf32>
    %32 = arith.addf %31, %30 : vector<128x1xf32>
    %c0_9 = arith.constant 0 : index
    %c0_10 = arith.constant 0 : index
    %c0_11 = arith.constant 0 : index
    %33 = vector.load %arg5[%c0_9, %c0_10, %c0_11] : memref<1x1x256xf32, #tpu.memory_space<vmem>>, vector<1x1x256xf32>
    %34 = vector.shape_cast %33 : vector<1x1x256xf32> to vector<1x256xf32>
    %35 = arith.subf %19, %24 : vector<1x1xf32>
    %36 = math.exp %35 : vector<1x1xf32>
    %37 = vector.broadcast %36 : vector<1x1xf32> to vector<1x256xf32>
    %38 = arith.mulf %34, %37 : vector<1x256xf32>
    %cst_12 = arith.constant dense<0.000000e+00> : vector<256xf32>
    %39 = vector.multi_reduction <add>, %27, %cst_12 [0] : vector<128x256xf32> to vector<256xf32>
    %40 = vector.shape_cast %39 : vector<256xf32> to vector<1x256xf32>
    %41 = arith.addf %38, %40 : vector<1x256xf32>
    %c0_13 = arith.constant 0 : index
    %c0_14 = arith.constant 0 : index
    %c0_15 = arith.constant 0 : index
    %42 = vector.load %arg5[%c0_13, %c0_14, %c0_15] : memref<1x1x256xf32, #tpu.memory_space<vmem>>, vector<1x1x256xf32>
    %43 = vector.shape_cast %42 : vector<1x1x256xf32> to vector<1x256xf32>
    %44 = vector.shape_cast %41 : vector<1x256xf32> to vector<1x1x256xf32>
    tpu.vector_store %arg5[%c0_13, %c0_14, %c0_15], %44 {strides = array<i32>} : memref<1x1x256xf32, #tpu.memory_space<vmem>>, vector<1x1x256xf32>,
    %c0_16 = arith.constant 0 : index
    %c0_17 = arith.constant 0 : index
    %45 = vector.load %arg6[%c0_16, %c0_17] : memref<1x1xf32, #tpu.memory_space<vmem>>, vector<1x1xf32>
    tpu.vector_store %arg6[%c0_16, %c0_17], %24 {strides = array<i32>} : memref<1x1xf32, #tpu.memory_space<vmem>>, vector<1x1xf32>,
    %c0_18 = arith.constant 0 : index
    %c0_19 = arith.constant 0 : index
    %46 = vector.load %arg7[%c0_18, %c0_19] : memref<128x1xf32, #tpu.memory_space<vmem>>, vector<128x1xf32>
    %cst_20 = arith.constant 2.000000e+00 : f32
    %47 = vector.broadcast %cst_20 : f32 to vector<128x1xf32>
    %48 = arith.mulf %47, %18 : vector<128x1xf32>
    %49 = arith.subf %32, %48 : vector<128x1xf32>
    %50 = arith.addf %46, %49 : vector<128x1xf32>
    %c0_21 = arith.constant 0 : index
    %c0_22 = arith.constant 0 : index
    %51 = vector.load %arg7[%c0_21, %c0_22] : memref<128x1xf32, #tpu.memory_space<vmem>>, vector<128x1xf32>
    tpu.vector_store %arg7[%c0_21, %c0_22], %50 {strides = array<i32>} : memref<128x1xf32, #tpu.memory_space<vmem>>, vector<128x1xf32>,
    %c0_i32_23 = arith.constant 0 : i32
    %52 = arith.cmpi eq, %arg1, %c0_i32_23 : i32
    %53 = arith.extui %52 : i1 to i32
    %c0_i32_24 = arith.constant 0 : i32
    %54 = arith.cmpi ne, %53, %c0_i32_24 : i32
    scf.if %54 {
      %c0_25 = arith.constant 0 : index
      %c0_26 = arith.constant 0 : index
      %55 = vector.load %arg7[%c0_25, %c0_26] : memref<128x1xf32, #tpu.memory_space<vmem>>, vector<128x1xf32>
      %56 = vector.shape_cast %55 : vector<128x1xf32> to vector<1x128x1xf32>
      %cst_27 = arith.constant dense<0.000000e+00> : vector<1xf32>
      %57 = vector.multi_reduction <add>, %56, %cst_27 [1, 2] : vector<1x128x1xf32> to vector<1xf32>
      %58 = vector.shape_cast %57 : vector<1xf32> to vector<1x1x1xf32>
      %59 = vector.extract %58[0, 0, 0] : f32 from vector<1x1x1xf32>
      %60 = vector.broadcast %59 : f32 to vector<1x128xf32>
      %c0_28 = arith.constant 0 : index
      %c0_29 = arith.constant 0 : index
      %c0_30 = arith.constant 0 : index
      %61 = vector.load %arg3[%c0_28, %c0_29, %c0_30] : memref<1x1x128xf32, #tpu.memory_space<vmem>>, vector<1x1x128xf32>
      %62 = vector.shape_cast %61 : vector<1x1x128xf32> to vector<1x128xf32>
      %63 = vector.shape_cast %60 : vector<1x128xf32> to vector<1x1x128xf32>
      tpu.vector_store %arg3[%c0_28, %c0_29, %c0_30], %63 {strides = array<i32>} : memref<1x1x128xf32, #tpu.memory_space<vmem>>, vector<1x1x128xf32>,
      %64 = vector.shape_cast %24 : vector<1x1xf32> to vector<1x1xf32>
      %65 = vector.broadcast %64 : vector<1x1xf32> to vector<1x128xf32>
      %c0_31 = arith.constant 0 : index
      %c0_32 = arith.constant 0 : index
      %c0_33 = arith.constant 0 : index
      %66 = vector.load %arg4[%c0_31, %c0_32, %c0_33] : memref<1x1x128xf32, #tpu.memory_space<vmem>>, vector<1x1x128xf32>
      %67 = vector.shape_cast %66 : vector<1x1x128xf32> to vector<1x128xf32>
      %68 = vector.shape_cast %65 : vector<1x128xf32> to vector<1x1x128xf32>
      tpu.vector_store %arg4[%c0_31, %c0_32, %c0_33], %68 {strides = array<i32>} : memref<1x1x128xf32, #tpu.memory_space<vmem>>, vector<1x1x128xf32>,
    } else {
    }
    return
  }
  func.func @transform_0(%arg0: i32, %arg1: i32) -> (i32, i32) {
    %c1_i32 = arith.constant 1 : i32
    %0 = arith.muli %arg0, %c1_i32 : i32
    %1 = arith.addi %0, %arg1 : i32
    %c0_i32 = arith.constant 0 : i32
    %c0_i32_0 = arith.constant 0 : i32
    return %1, %c0_i32 : i32, i32
  }
  func.func @transform_1(%arg0: i32, %arg1: i32) -> (i32, i32, i32) {
    %c0_i32 = arith.constant 0 : i32
    %c0_i32_0 = arith.constant 0 : i32
    %c0_i32_1 = arith.constant 0 : i32
    return %arg0, %c0_i32, %c0_i32_0 : i32, i32, i32
  }
  func.func @transform_2(%arg0: i32, %arg1: i32) -> (i32, i32, i32) {
    %c0_i32 = arith.constant 0 : i32
    %c0_i32_0 = arith.constant 0 : i32
    %c0_i32_1 = arith.constant 0 : i32
    return %arg0, %c0_i32, %c0_i32_0 : i32, i32, i32
  }
  func.func @transform_3(%arg0: i32, %arg1: i32) -> (i32, i32, i32) {
    %c0_i32 = arith.constant 0 : i32
    %c0_i32_0 = arith.constant 0 : i32
    %c0_i32_1 = arith.constant 0 : i32
    return %arg0, %c0_i32, %c0_i32_0 : i32, i32, i32
  }
}

</mosaic_0001>

<bundles_post_ra>
// kernel: tpu_custom_call.1
= control target key start
LH: loop header
LB: loop body
LE: loop exit
PB: predicated region body
PF: predicated region fallthrough
CT: control target
= control target key end

     0   :  { %9 = vsyncpa [#allocation5], 0  ;;  %s2303_s0 = inlined_call_operand.hbm [shape: f32[256,256], index: 0, kind: input, shape index: {}]   ;;  %s2304_s1 = inlined_call_operand.hbm [shape: f32[2,1,128], index: 1, kind: output, shape index: {0}]   ;;  %s2305_s2 = inlined_call_operand.hbm [shape: f32[2,1,128], index: 2, kind: output, shape index: {1}]   ;;  %s2306_s3 = inlined_call_operand.hbm [shape: f32[2,1,256], index: 3, kind: output, shape index: {2}]  }
   0x1   :  { %11 = vsyncpa [#allocation5 + $0x1], 0 }
   0x2   :  { %12 = vsyncpa [#allocation6], 0 }
   0x3   :  { %14 = vsyncpa [#allocation6 + $0x1], 0 }
   0x4   :  { %15 = vsyncpa [#allocation9], 0 }
   0x5   :  { %17 = vsyncpa [#allocation9 + $0x1], 0  ;;  %s1559_s12 = smov 0   ;;  %s1561_s13 = smov 0  }
   0x6   :  { %s1563_s14 = smov 0   ;;  %s1565_s15 = smov 0  }
   0x7   :  { %s1567_s16 = smov 0   ;;  %s1569_s17 = smov 0  }
   0x8 LB: > { %s1590_s18 = sadd.s32 4294967295, %s1527_s17   ;;  %s1154_s19 = sadd.s32 4294967294, %s1527_s17   ;;  %s1527_s17 = sphi %s1569_s17, %s23_s17   ;;  %s1523_s16 = sphi %s1567_s16, %s2341_s16   ;;  %s1519_s15 = sphi %s1565_s15, %s2340_s15   ;;  %s1515_s14 = sphi %s1563_s14, %s2339_s14   ;;  %s1511_s13 = sphi %s1561_s13, %s2338_s13   ;;  %s1507_s12 = sphi %s1559_s12, %s2337_s12  }
   0x9   : > { %s35_s20 = sadd.s32 1, %s1523_s16  ;;  %s44_s21 = sadd.s32 1, %s1515_s14 }
   0xa   : > { %p37_p0 = scmp.ge.s32.totalorder %s35_s20, 2  ;;  %p51_p1 = scmp.ne.s32.totalorder %s1515_s14, %s1511_s13 }
   0xb   : > { %p52_p2 = scmp.eq.s32.totalorder %s1527_s17, 0  ;;  %p57_p3 = scmp.ne.s32.totalorder %s1511_s13, %s1507_s12 }
   0xc   : > { %s2343_s20 = smov (%p37_p0, %s35_s20), 0  ;;  %p58_p5 = scmp.eq.s32.totalorder %s1590_s18, 0 }
   0xd   : > { %p1602_p4 = por %p52_p2, %p51_p1  ;;  %s41_s23 = ssub.s32 %s1523_s16, %s2343_s20 }
   0xe   : > { %p81_p6 = scmp.eq.s32.totalorder %s1590_s18, 1  ;;  %p42_p7 = scmp.eq.s32.totalorder %s41_s23, 0 }
   0xf   : > { %p1610_p8 = por %p58_p5, %p57_p3  ;;  %p87_p10 = scmp.eq.s32.totalorder %s1154_s19, 1 }
  0x10   : > { %p1614_p9 = por %p81_p6, %p51_p1  ;;  %p1199_p13 = scmp.lt.s32.totalorder %s1527_s17, 2 }
  0x11   : > { %s1621_s26 = scalar_select %p42_p7, %s1515_s14, %s44_s21  }
  0x12   : > { %s2319_s25 = scalar_select %p1614_p9, 1, 0 }
  0x13   : > { %p1623_p11 = por %p87_p10, %p57_p3  ;;  %s159_s28 = sand.u32 1, %s1515_s14  }
  0x14   : > { %s1157_s29 = sshll.u32 %s159_s28, 8  ;;  %s1173_s30 = sshll.u32 %s1523_s16, 12 }
  0x15   : > { %s2320_s27 = scalar_select %p1623_p11, 1, 0 }
  0x16   : > { %s1634_s6 = scalar_lea.hbm %s2303_s0, %s1173_s30  ;;  %s163_s7 = scalar_lea.vmem [#allocation4], %s1157_s29 }
  0x17   : > { %s172_s8 = sshll.u32 %s163_s7, 4  ;;  %p1640_p0 = pnand %p1199_p13, %p1602_p4  ;;  %s1636_s8 = int_to_ptr.vmem [resolvable:$true] %s172_s8 }
  0x18   : > { %s1645_s10 = scalar_lea.sflag [#allocation5], %s159_s28  ;;  %s1355_s11 = scalar_lea.hbm %s1634_s6, 4096 }
  0x19   : > { %p1356_p2 = scmp.ne.s32.totalorder %s1634_s6, %s1355_s11  ;;  %p1357_p3 = pneg %p1640_p0 }
  0x1a   : > { %s1360_s22 = scalar_lea.hbm %s2303_s0, 8192  ;;  %p1361_p4 = scmp.lt.u32.totalorder %s1634_s6, %s2303_s0 }
  0x1b   : > { %p1358_p5 = pnand %p1357_p3, %p1356_p2  ;;  %p1362_p7 = scmp.lt.u32.totalorder %s1360_s22, %s1355_s11 }
  0x1c   : > { %p1364_p13 = scmp.lt.u32.totalorder %s1355_s11, %s1634_s6 }
  0x1d   : > { %p1359_p6 = pneg %p1358_p5  ;;  %p1363_p10 = por %p1362_p7, %p1361_p4 }
  0x1f   : > { %p1365_p12 = por %p1364_p13, %p1363_p10 }
  0x21   : > { %p1366_p1 = pnand %p1365_p12, %p1359_p6 }
  0x23   : > { %1369 = shalt.err (!%p1366_p1)
}
  0x24   : > { %s1370_s28 = scalar_lea.vmem %s1636_s8, 4096  ;;  %s1529_s4 = smov [#allocation4]  }
  0x25   : > { %p1371_p2 = scmp.ne.s32.totalorder %s1636_s8, %s1370_s28  ;;  %s1375_s5 = sshll.u32 %s1529_s4, 4  ;;  %s1376_s5 = int_to_ptr.vmem [resolvable:$false] %s1375_s5 }
  0x26   : > { %s1377_s7 = scalar_lea.vmem %s1376_s5, 8192  ;;  %p1378_p9 = scmp.lt.s32.totalorder %s1636_s8, %s1376_s5 }
  0x27   : > { %p1373_p5 = pnand %p1371_p2, %p1357_p3  ;;  %p1379_p4 = scmp.lt.s32.totalorder %s1377_s7, %s1370_s28 }
  0x29   : > { %p1374_p11 = pneg %p1373_p5  ;;  %p1380_p7 = por %p1379_p4, %p1378_p9 }
  0x2b   : > { %p1381_p10 = pnand %p1380_p7, %p1374_p11 }
  0x2d   : > { %1384 = shalt.err (!%p1381_p10)
}
  0x2e   : > { %s1530_s11 = smov 256   ;;  %s1531_s21 = smov 16  }
  0x2f   : > { %1188 = dma.hbm_to_vmem [thread:$0]  (!%p1640_p0), %s1634_s6, 4096, %s1636_s8, %s1645_s10, %s1530_s11, %s1530_s11, %s1531_s21  }
  0x30   : > { %p180_p12 = scmp.lt.s32.totalorder %s1527_s17, 3  ;;  %p2322_p1 = scmp.ge.s32.totalorder %s1527_s17, 1 }
  0x32   : > { %p181_p3 = pnand %p2322_p1, %p180_p12 }
  0x34   : > { %184 = sbr.rel (%p181_p3) target bundleno = 866 (0x362), region = 24 }
  0x3b   : > { %s1677_s23 = sand.u32 1, %s1511_s13  }
  0x3c   : > { %s1162_s22 = sshll.u32 %s1677_s23, 8  ;;  %s187_s29 = scalar_lea.sflag [#allocation5], %s1677_s23 }
  0x3d   : > { %s1681_s30 = scalar_lea.vmem [#allocation4], %s1162_s22 }
  0x3e   : > { %1494 = dma.done.wait (%p1610_p8), %s187_s29, 4096  }
  0x3f   : > { %1496 = vsyncadd (%p1610_p8), %s187_s29, 4294963200  ;;  %v256_v0 = vld [vmem:[%s1681_s30 + $0x20] sm:$0xff]  ;;  %v257_v1 = vld [vmem:[%s1681_s30 + $0x28] sm:$0xff]  ;;  %vm228_vm0 = vcmask 0   ;;  %s1164_s24 = sshll.u32 %s1519_s15, 7  ;;  %s1163_s6 = sshll.u32 %s1677_s23, 1 }
  0x40   : > { %v252_v2 = vld [vmem:[%s1681_s30] sm:$0xff]  ;;  %v1690_v3 = vmul.f32 14.285714, %v256_v0  ;;  %v1692_v4 = vmul.f32 14.285714, %v257_v1  ;;  %v253_v5 = vld [vmem:[%s1681_s30 + $0x8] sm:$0xff] }
  0x41   : > { %v258_v6 = vld [vmem:[%s1681_s30 + $0x30] sm:$0xff]  ;;  %v1696_v7 = vmul.f32 14.285714, %v252_v2  ;;  %v1698_v8 = vmul.f32 14.285714, %v253_v5  ;;  %v259_v9 = vld [vmem:[%s1681_s30 + $0x38] sm:$0xff] }
  0x42   : > { %v254_v10 = vld [vmem:[%s1681_s30 + $0x10] sm:$0xff]  ;;  %v473_v11 = vmax.f32 %v1690_v3, %v1692_v4  ;;  %v1704_v12 = vmul.f32 14.285714, %v258_v6  ;;  %v1706_v13 = vmul.f32 14.285714, %v259_v9  ;;  %v255_v14 = vld [vmem:[%s1681_s30 + $0x18] sm:$0xff] }
  0x43   : > { %v262_v15 = vld [vmem:[%s1681_s30 + $0x50] sm:$0xff]  ;;  %v467_v16 = vmax.f32 %v1696_v7, %v1698_v8  ;;  %v1712_v17 = vmul.f32 14.285714, %v254_v10  ;;  %v1714_v18 = vmul.f32 14.285714, %v255_v14  ;;  %v263_v19 = vld [vmem:[%s1681_s30 + $0x58] sm:$0xff] }
  0x44   : > { %v260_v20 = vld [vmem:[%s1681_s30 + $0x40] sm:$0xff]  ;;  %474 = vmax.xlane.f32.xlu1 %v473_v11  ;;  %v476_v21 = vmax.f32 %v1704_v12, %v1706_v13  ;;  %v1720_v22 = vmul.f32 14.285714, %v262_v15  ;;  %v1722_v23 = vmul.f32 14.285714, %v263_v19  ;;  %v261_v24 = vld [vmem:[%s1681_s30 + $0x48] sm:$0xff] }
  0x45   : > { %468 = vmax.xlane.f32.xlu0 %v467_v16  ;;  %v470_v25 = vmax.f32 %v1712_v17, %v1714_v18  ;;  %v1727_v26 = vmul.f32 14.285714, %v260_v20  ;;  %v1729_v27 = vmul.f32 14.285714, %v261_v24  ;;  %v266_v28 = vld [vmem:[%s1681_s30 + $0x70] sm:$0xff]  ;;  %v267_v29 = vld [vmem:[%s1681_s30 + $0x78] sm:$0xff] }
  0x46   : > { %v264_v30 = vld [vmem:[%s1681_s30 + $0x60] sm:$0xff]  ;;  %v265_v31 = vld [vmem:[%s1681_s30 + $0x68] sm:$0xff]  ;;  %v482_v32 = vmax.f32 %v1720_v22, %v1722_v23  ;;  %v1737_v33 = vmul.f32 14.285714, %v266_v28  ;;  %v1739_v34 = vmul.f32 14.285714, %v267_v29  ;;  %v2308_v29 = vlaneseq }
  0x47   : > { %v479_v35 = vmax.f32 %v1727_v26, %v1729_v27  ;;  %v1743_v36 = vmul.f32 14.285714, %v264_v30  ;;  %v1745_v37 = vmul.f32 14.285714, %v265_v31  ;;  %v270_v38 = vld [vmem:[%s1681_s30 + $0x90] sm:$0xff]  ;;  %v271_v39 = vld [vmem:[%s1681_s30 + $0x98] sm:$0xff] }
  0x48   : > { %477 = vmax.xlane.f32.xlu1 %v476_v21  ;;  %v268_v40 = vld [vmem:[%s1681_s30 + $0x80] sm:$0xff]  ;;  %v269_v41 = vld [vmem:[%s1681_s30 + $0x88] sm:$0xff]  ;;  %v488_v42 = vmax.f32 %v1737_v33, %v1739_v34  ;;  %v1753_v43 = vmul.f32 14.285714, %v270_v38  ;;  %v1755_v44 = vmul.f32 14.285714, %v271_v39  ;;  %v1825_v39 = vstv %s1164_s24 }
  0x49   : > { %471 = vmax.xlane.f32.xlu0 %v470_v25  ;;  %v485_v45 = vmax.f32 %v1743_v36, %v1745_v37  ;;  %v1759_v46 = vmul.f32 14.285714, %v268_v40  ;;  %v1761_v47 = vmul.f32 14.285714, %v269_v41  ;;  %v274_v48 = vld [vmem:[%s1681_s30 + $0xb0] sm:$0xff]  ;;  %v275_v49 = vld [vmem:[%s1681_s30 + $0xb8] sm:$0xff] }
  0x4a   : > { %2323 = vst [vmem:[#allocation14_spill] sm:$0xff] %v1753_v43  ;;  %2324 = vst [vmem:[#allocation15_spill] sm:$0xff] %v1755_v44  ;;  %v272_v50 = vld [vmem:[%s1681_s30 + $0xa0] sm:$0xff]  ;;  %v273_v51 = vld [vmem:[%s1681_s30 + $0xa8] sm:$0xff]  ;;  %v494_v52 = vmax.f32 %v1753_v43, %v1755_v44  ;;  %v1769_v53 = vmul.f32 14.285714, %v274_v48 }
  0x4b   : > { %v1771_v54 = vmul.f32 14.285714, %v275_v49  ;;  %v491_v55 = vmax.f32 %v1759_v46, %v1761_v47  ;;  %v1775_v56 = vmul.f32 14.285714, %v272_v50  ;;  %v1777_v57 = vmul.f32 14.285714, %v273_v51 }
  0x4c   : > { %483 = vmax.xlane.f32.xlu1 %v482_v32  ;;  %2325 = vst [vmem:[#allocation16_spill] sm:$0xff] %v1769_v53  ;;  %v278_v58 = vld [vmem:[%s1681_s30 + $0xd0] sm:$0xff]  ;;  %v279_v59 = vld [vmem:[%s1681_s30 + $0xd8] sm:$0xff]  ;;  %v276_v60 = vld [vmem:[%s1681_s30 + $0xc0] sm:$0xff]  ;;  %v1532_v28 = vmov -inf   ;;  %v1533_v30 = vmov 0  }
  0x4d   : > { %480 = vmax.xlane.f32.xlu0 %v479_v35  ;;  %2326 = vst [vmem:[#allocation17_spill] sm:$0xff] %v1771_v54  ;;  %v277_v61 = vld [vmem:[%s1681_s30 + $0xc8] sm:$0xff]  ;;  %v500_v62 = vmax.f32 %v1769_v53, %v1771_v54  ;;  %v1785_v63 = vmul.f32 14.285714, %v278_v58  ;;  %v1787_v0 = vmul.f32 14.285714, %v279_v59  ;;  %v497_v1 = vmax.f32 %v1775_v56, %v1777_v57  ;;  %1256 = vset.pattern.permute.xlu1 %v1533_v30 }
  0x4e   : > { %v1791_v2 = vmul.f32 14.285714, %v276_v60  ;;  %v1793_v5 = vmul.f32 14.285714, %v277_v61  ;;  %v282_v6 = vld [vmem:[%s1681_s30 + $0xf0] sm:$0xff]  ;;  %v283_v9 = vld [vmem:[%s1681_s30 + $0xf8] sm:$0xff]  ;;  %1255 = vset.pattern.permute.xlu0 %v1533_v30 }
  0x4f   : > { %v280_v10 = vld [vmem:[%s1681_s30 + $0xe0] sm:$0xff]  ;;  %v281_v11 = vld [vmem:[%s1681_s30 + $0xe8] sm:$0xff]  ;;  %v506_v14 = vmax.f32 %v1785_v63, %v1787_v0  ;;  %v1801_v15 = vmul.f32 14.285714, %v282_v6  ;;  %v1803_v16 = vmul.f32 14.285714, %v283_v9 }
  0x50   : > { %489 = vmax.xlane.f32.xlu1 %v488_v42  ;;  %v503_v19 = vmax.f32 %v1791_v2, %v1793_v5  ;;  %v1807_v20 = vmul.f32 14.285714, %v280_v10  ;;  %v1809_v21 = vmul.f32 14.285714, %v281_v11  ;;  %229 = vst.msk [vmem:[#allocation2] sm:$0x1] %vm228_vm0, %v1532_v28 }
  0x51   : > { %486 = vmax.xlane.f32.xlu0 %v485_v45  ;;  %v512_v24 = vmax.f32 %v1801_v15, %v1803_v16  ;;  %v1817_v31 = vshrl.u32 %v2308_v29, 7  ;;  %v1821_v32 = vand.u32 127, %v2308_v29  ;;  %s2090_s8 = scalar_lea.vmem [#allocation10], %s1163_s6  ;;  %s976_s9 = sand.u32 1, %s1590_s18  }
  0x52   : > { %v509_v25 = vmax.f32 %v1807_v20, %v1809_v21  ;;  %s1166_s10 = sshll.u32 %s1519_s15, 4  ;;  %s213_s28 = scalar_lea.vmem [#allocation8], %s1677_s23 }
  0x53   : > { %v319_v35 = vadd.s32 8, %v1817_v31  ;;  %v321_v38 = vadd.s32 24, %v1817_v31  ;;  %v335_v40 = vadd.s32 %v1825_v39, %v1817_v31  ;;  %v1830_v41 = vadd.s32 128, %v1821_v32  ;;  %s1007_s4 = sshll.u32 %s213_s28, 4  ;;  %s1174_s5 = sshll.u32 %s1519_s15, 5  ;;  %s2191_s4 = int_to_ptr.vmem [resolvable:$true] %s1007_s4 }
  0x54   : > { %495 = vmax.xlane.f32.xlu1 %v494_v52  ;;  %s1021_s7 = sshll.u32 %s2090_s8, 4  ;;  %s2189_s22 = scalar_lea.hbm %s2305_s2, %s1166_s10  ;;  %s2198_s7 = int_to_ptr.vmem [resolvable:$true] %s1021_s7 }
  0x55   : > { %492 = vmax.xlane.f32.xlu0 %v491_v55  ;;  %v336_v42 = vadd.s32 %v1825_v39, %v319_v35  ;;  %v338_v45 = vadd.s32 %v1825_v39, %v321_v38  ;;  %vm354_vm1 = vcmp.eq.s32.totalorder %v1821_v32, %v335_v40  ;;  %vm355_vm2 = vcmp.eq.s32.totalorder %v1830_v41, %v335_v40  ;;  %s2196_s30 = scalar_lea.hbm %s2306_s3, %s1174_s5  ;;  %s2200_s24 = scalar_lea.sflag [#allocation9], %s976_s9 }
  0x56   : > { %v386_v48 = vsel %vm354_vm1, %v1696_v7, 0.0  ;;  %v387_v49 = vsel %vm355_vm2, %v1698_v8, 0.0  ;;  %vm235_vm1 = vcmask 7168   ;;  %s1385_s6 = scalar_lea.vmem %s2191_s4, 16  ;;  %p2334_p9 = scmp.ne.s32.totalorder %s2319_s25, 0 }
  0x57   : > { %vm356_vm3 = vcmp.eq.s32.totalorder %v1821_v32, %v336_v42  ;;  %vm357_vm4 = vcmp.eq.s32.totalorder %v1830_v41, %v336_v42  ;;  %v418_v52 = vadd.f32 %v387_v49, %v386_v48  ;;  %vm360_vm5 = vcmp.eq.s32.totalorder %v1821_v32, %v338_v45  ;;  %p1386_p8 = scmp.ne.s32.totalorder %s2191_s4, %s1385_s6 }
  0x58   : > { %501 = vmax.xlane.f32.xlu1 %v500_v62  ;;  %v388_v50 = vsel %vm356_vm3, %v1712_v17, 0.0  ;;  %v389_v51 = vsel %vm357_vm4, %v1714_v18, 0.0  ;;  %vm361_vm6 = vcmp.eq.s32.totalorder %v1830_v41, %v338_v45  ;;  %v392_v58 = vsel %vm360_vm5, %v1704_v12, 0.0 }
  0x59   : > { %498 = vmax.xlane.f32.xlu0 %v497_v1  ;;  %v421_v55 = vadd.f32 %v389_v51, %v388_v50  ;;  %v393_v59 = vsel %vm361_vm6, %v1706_v13, 0.0  ;;  %p1387_p11 = pnand %p1386_p8, %p2334_p9 }
  0x5a   : > { %v427_v60 = vadd.f32 %v393_v59, %v392_v58 }
  0x5b   : > { %p1388_p0 = pneg %p1387_p11 }
  0x5c   : > { %507 = vmax.xlane.f32.xlu1 %v506_v14 }
  0x5d   : > { %504 = vmax.xlane.f32.xlu0 %v503_v19 }
  0x60   : > { %513 = vmax.xlane.f32.xlu1 %v512_v24 }
  0x61   : > { %510 = vmax.xlane.f32.xlu0 %v509_v25 }
  0x64   : > { %419 = vadd.xlane.f32.xlu1 %v418_v52 }
  0x68   : > { %422 = vadd.xlane.f32.xlu1 %v421_v55 }
  0x6c   : > { %428 = vadd.xlane.f32.xlu1 %v427_v60 }
  0xd1   : > { %v475_v61 = vpop.xlane.xlu1 %474 }
  0xd2   : > { %v469_v62 = vpop.xlane.xlu0 %468 }
  0xd5   : > { %v478_v1 = vpop.xlane.xlu1 %477 }
  0xd6   : > { %v472_v6 = vpop.xlane.xlu0 %471 }
  0xd9   : > { %v484_v9 = vpop.xlane.xlu1 %483 }
  0xda   : > { %v481_v10 = vpop.xlane.xlu0 %480  ;;  %v516_v30 = vmax.f32 %v472_v6, %v484_v9 }
  0xdb   : > { %v515_v35 = vmax.f32 %v469_v62, %v481_v10  ;;  %v1846_v10 = vld [vmem:[#allocation2] sm:$0x1] }
  0xdd   : > { %v490_v11 = vpop.xlane.xlu1 %489 }
  0xde   : > { %v487_v14 = vpop.xlane.xlu0 %486  ;;  %v518_v40 = vmax.f32 %v478_v1, %v490_v11  ;;  %v1850_v11 = vsub.s32 0, %v1817_v31 }
  0xdf   : > { %v517_v45 = vmax.f32 %v475_v61, %v487_v14  ;;  %v322_v61 = vadd.s32 32, %v1817_v31 }
  0xe1   : > { %v496_v19 = vpop.xlane.xlu1 %495 }
  0xe2   : > { %v493_v24 = vpop.xlane.xlu0 %492  ;;  %v520_v48 = vmax.f32 %v516_v30, %v496_v19  ;;  %v339_v19 = vadd.s32 %v1825_v39, %v322_v61  ;;  %v325_v30 = vadd.s32 56, %v1817_v31 }
  0xe3   : > { %v519_v49 = vmax.f32 %v515_v35, %v493_v24 }
  0xe4   : > { %vm362_vm7 = vcmp.eq.s32.totalorder %v1821_v32, %v339_v19  ;;  %vm363_vm8 = vcmp.eq.s32.totalorder %v1830_v41, %v339_v19  ;;  %v330_v19 = vadd.s32 96, %v1817_v31 }
  0xe5   : > { %v502_v25 = vpop.xlane.xlu1 %501 }
  0xe6   : > { %v499_v28 = vpop.xlane.xlu0 %498  ;;  %v522_v50 = vmax.f32 %v518_v40, %v502_v25 }
  0xe7   : > { %v521_v51 = vmax.f32 %v517_v45, %v499_v28  ;;  %v324_v28 = vadd.s32 48, %v1817_v31 }
  0xe9   : > { %v508_v38 = vpop.xlane.xlu1 %507  ;;  %v341_v35 = vadd.s32 %v1825_v39, %v324_v28 }
  0xea   : > { %v505_v42 = vpop.xlane.xlu0 %504  ;;  %v524_v52 = vmax.f32 %v520_v48, %v508_v38  ;;  %v342_v38 = vadd.s32 %v1825_v39, %v325_v30 }
  0xeb   : > { %v523_v55 = vmax.f32 %v519_v49, %v505_v42  ;;  %vm366_vm11 = vcmp.eq.s32.totalorder %v1821_v32, %v341_v35  ;;  %vm367_vm12 = vcmp.eq.s32.totalorder %v1830_v41, %v341_v35 }
  0xec   : > { %vm368_vm13 = vcmp.eq.s32.totalorder %v1821_v32, %v342_v38  ;;  %v398_v48 = vsel %vm366_vm11, %v1743_v36, 0.0  ;;  %v399_v49 = vsel %vm367_vm12, %v1745_v37, 0.0  ;;  %vm369_vm14 = vcmp.eq.s32.totalorder %v1830_v41, %v342_v38 }
  0xed   : > { %v514_v58 = vpop.xlane.xlu1 %513  ;;  %v527_v54 = vmax.f32 %v523_v55, %v524_v52  ;;  %v401_v52 = vsel %vm369_vm14, %v1739_v34, 0.0 }
  0xee   : > { %v526_v59 = vmax.f32 %v522_v50, %v514_v58  ;;  %v511_v60 = vpop.xlane.xlu0 %510  ;;  %v436_v50 = vadd.f32 %v399_v49, %v398_v48  ;;  %v320_v58 = vadd.s32 16, %v1817_v31  ;;  %v347_v48 = vadd.s32 %v1825_v39, %v330_v19 }
  0xef   : > { %v525_v29 = vmax.f32 %v521_v51, %v511_v60  ;;  %v400_v51 = vsel %vm368_vm13, %v1737_v33, 0.0 }
  0xf0   : > { %v439_v55 = vadd.f32 %v401_v52, %v400_v51  ;;  %vm378_vm4 = vcmp.eq.s32.totalorder %v1821_v32, %v347_v48  ;;  %vm379_vm5 = vcmp.eq.s32.totalorder %v1830_v41, %v347_v48 }
  0xf1   : > { %v528_v53 = vmax.f32 %v525_v29, %v526_v59  ;;  %v337_v59 = vadd.s32 %v1825_v39, %v320_v58 }
  0xf3   : > { %v529_v44 = vmax.f32 %v527_v54, %v528_v53  ;;  %v394_v53 = vsel %vm362_vm7, %v1727_v26, 0.0  ;;  %v395_v54 = vsel %vm363_vm8, %v1729_v27, 0.0  ;;  %vm358_vm15 = vcmp.eq.s32.totalorder %v1821_v32, %v337_v59 }
  0xf4   : > { %v430_v29 = vadd.f32 %v395_v54, %v394_v53  ;;  %v390_v60 = vsel %vm358_vm15, %v1690_v3, 0.0 }
  0xf5   : > { %v530_v43 = vrot.slane %v529_v44, 4 }
  0xf6   : > { %431 = vadd.xlane.f32.xlu1 %v430_v29 }
  0xf7   : > { %v531_v6 = vmax.f32 %v529_v44, %v530_v43  ;;  %v323_v43 = vadd.s32 40, %v1817_v31 }
  0xf9   : > { %v532_v62 = vrot.slane %v531_v6, 2  ;;  %v340_v25 = vadd.s32 %v1825_v39, %v323_v43 }
  0xfb   : > { %v533_v9 = vmax.f32 %v531_v6, %v532_v62  ;;  %vm364_vm9 = vcmp.eq.s32.totalorder %v1821_v32, %v340_v25  ;;  %vm365_vm10 = vcmp.eq.s32.totalorder %v1830_v41, %v340_v25 }
  0xfc   : > { %v396_v40 = vsel %vm364_vm9, %v1720_v22, 0.0  ;;  %v397_v42 = vsel %vm365_vm10, %v1722_v23, 0.0 }
  0xfd   : > { %v534_v1 = vrot.slane %v533_v9, 1  ;;  %v433_v45 = vadd.f32 %v397_v42, %v396_v40 }
  0xff   : > { %v535_v14 = vmax.f32 %v533_v9, %v534_v1  ;;  %434 = vadd.xlane.f32.xlu1 %v433_v45  ;;  %v1534_v9 = vmov 0.0   ;;  %v328_v1 = vadd.s32 80, %v1817_v31 }
 0x100   : > { %236 = vst.msk [vmem:[#allocation3] sm:$0xff] %vm235_vm1, %v1534_v9  ;;  %237 = vst.msk [vmem:[#allocation3 + $0x8] sm:$0xff] %vm235_vm1, %v1534_v9 }
 0x101   : > { %v1854_v24 = vmax.f32 %v1846_v10, %v535_v14  ;;  %238 = vst.msk [vmem:[#allocation3 + $0x10] sm:$0xff] %vm235_vm1, %v1534_v9  ;;  %239 = vst.msk [vmem:[#allocation3 + $0x18] sm:$0xff] %vm235_vm1, %v1534_v9  ;;  %v345_v14 = vadd.s32 %v1825_v39, %v328_v1 }
 0x102   : > { %240 = vst.msk [vmem:[#allocation3 + $0x20] sm:$0xff] %vm235_vm1, %v1534_v9  ;;  %241 = vst.msk [vmem:[#allocation3 + $0x28] sm:$0xff] %vm235_vm1, %v1534_v9 }
 0x103   : > { %v1861_v44 = vrot.slane %v1854_v24, %v1850_v11  ;;  %820 = vst.msk [vmem:[#allocation2] sm:$0x1] %vm228_vm0, %v1854_v24  ;;  %437 = vadd.xlane.f32.xlu1 %v436_v50  ;;  %vm359_vm0 = vcmp.eq.s32.totalorder %v1830_v41, %v337_v59  ;;  %vm374_vm2 = vcmp.eq.s32.totalorder %v1821_v32, %v345_v14 }
 0x104   : > { %v391_v6 = vsel %vm359_vm0, %v1692_v4, 0.0  ;;  %242 = vst.msk [vmem:[#allocation3 + $0x30] sm:$0xff] %vm235_vm1, %v1534_v9  ;;  %243 = vst.msk [vmem:[#allocation3 + $0x38] sm:$0xff] %vm235_vm1, %v1534_v9  ;;  %vm375_vm3 = vcmp.eq.s32.totalorder %v1830_v41, %v345_v14 }
 0x105   : > { %543 = vperm.xlu0 %1255, %v1861_v44   ;;  %v424_v62 = vadd.f32 %v391_v6, %v390_v60  ;;  %244 = vst.msk [vmem:[#allocation3 + $0x40] sm:$0xff] %vm235_vm1, %v1534_v9  ;;  %245 = vst.msk [vmem:[#allocation3 + $0x48] sm:$0xff] %vm235_vm1, %v1534_v9 }
 0x106   : > { %246 = vst.msk [vmem:[#allocation3 + $0x50] sm:$0xff] %vm235_vm1, %v1534_v9  ;;  %247 = vst.msk [vmem:[#allocation3 + $0x58] sm:$0xff] %vm235_vm1, %v1534_v9 }
 0x107   : > { %440 = vadd.xlane.f32.xlu1 %v439_v55  ;;  %248 = vst.msk [vmem:[#allocation3 + $0x60] sm:$0xff] %vm235_vm1, %v1534_v9  ;;  %249 = vst.msk [vmem:[#allocation3 + $0x68] sm:$0xff] %vm235_vm1, %v1534_v9  ;;  %v406_v55 = vsel %vm374_vm2, %v1775_v56, 0.0 }
 0x108   : > { %250 = vst.msk [vmem:[#allocation3 + $0x70] sm:$0xff] %vm235_vm1, %v1534_v9  ;;  %251 = vst.msk [vmem:[#allocation3 + $0x78] sm:$0xff] %vm235_vm1, %v1534_v9 }
 0x124   : > { %425 = vadd.xlane.f32.xlu0 %v424_v62  ;;  %v332_v62 = vadd.s32 112, %v1817_v31 }
 0x184   : > { %v1924_v61 = vpop.permute.xlu0 %543 }
 0x185   : > { %v572_v43 = vsub.f32 %v1785_v63, %v1924_v61  ;;  %v573_v53 = vsub.f32 %v1787_v0, %v1924_v61  ;;  %v546_v54 = vsub.f32 %v1696_v7, %v1924_v61  ;;  %v547_v29 = vsub.f32 %v1698_v8, %v1924_v61 }
 0x186   : > { %v574_v25 = vsub.f32 %v1807_v20, %v1924_v61  ;;  %v575_v28 = vsub.f32 %v1809_v21, %v1924_v61  ;;  %v548_v40 = vsub.f32 %v1712_v17, %v1924_v61  ;;  %v549_v45 = vsub.f32 %v1714_v18, %v1924_v61 }
 0x187   : > { %v630_v30 = vmul.f32 1.442695, %v572_v43  ;;  %v632_v35 = vmul.f32 1.442695, %v573_v53  ;;  %v578_v38 = vmul.f32 1.442695, %v546_v54  ;;  %v576_v8 = vsub.f32 %v1801_v15, %v1924_v61 }
 0x188   : > { %v580_v42 = vmul.f32 1.442695, %v547_v29  ;;  %v634_v7 = vmul.f32 1.442695, %v574_v25  ;;  %v636_v49 = vmul.f32 1.442695, %v575_v28  ;;  %v577_v50 = vsub.f32 %v1803_v16, %v1924_v61 }
 0x189   : > { %1257 = vpow2.f32 %v630_v30  ;;  %v582_v17 = vmul.f32 1.442695, %v548_v40  ;;  %v550_v51 = vsub.f32 %v1690_v3, %v1924_v61  ;;  %v584_v18 = vmul.f32 1.442695, %v549_v45 }
 0x18a   : > { %1259 = vpow2.f32 %v632_v35  ;;  %v551_v52 = vsub.f32 %v1692_v4, %v1924_v61  ;;  %v638_v58 = vmul.f32 1.442695, %v576_v8  ;;  %v552_v59 = vsub.f32 %v1704_v12, %v1924_v61 }
 0x18b   : > { %1261 = vpow2.f32 %v578_v38  ;;  %v640_v60 = vmul.f32 1.442695, %v577_v50  ;;  %v553_v3 = vsub.f32 %v1706_v13, %v1924_v61  ;;  %v586_v6 = vmul.f32 1.442695, %v550_v51 }
 0x18c   : > { %1263 = vpow2.f32 %v580_v42  ;;  %v554_v4 = vsub.f32 %v1727_v26, %v1924_v61  ;;  %v588_v1 = vmul.f32 1.442695, %v551_v52  ;;  %v407_v12 = vsel %vm375_vm3, %v1777_v57, 0.0 }
 0x18d   : > { %1265 = vpow2.f32 %v634_v7  ;;  %v555_v19 = vsub.f32 %v1729_v27, %v1924_v61  ;;  %v590_v13 = vmul.f32 1.442695, %v552_v59  ;;  %v410_v43 = vsel %vm378_vm4, %v1791_v2, 0.0 }
 0x18e   : > { %1267 = vpow2.f32 %v636_v49  ;;  %v556_v53 = vsub.f32 %v1720_v22, %v1924_v61  ;;  %v592_v26 = vmul.f32 1.442695, %v553_v3  ;;  %v411_v54 = vsel %vm379_vm5, %v1793_v5, 0.0 }
 0x18f   : > { %1269 = vpow2.f32 %v582_v17  ;;  %v557_v29 = vsub.f32 %v1722_v23, %v1924_v61  ;;  %v594_v14 = vmul.f32 1.442695, %v554_v4  ;;  %v1979_v27 = vadd.s32 %v1825_v39, %v332_v62 }
 0x190   : > { %1271 = vpow2.f32 %v584_v18  ;;  %v558_v28 = vsub.f32 %v1743_v36, %v1924_v61  ;;  %v1985_v22 = vadd.f32 %v407_v12, %v406_v55  ;;  %v596_v35 = vmul.f32 1.442695, %v555_v19 }
 0x191   : > { %1273 = vpow2.f32 %v638_v58  ;;  %v559_v38 = vsub.f32 %v1745_v37, %v1924_v61  ;;  %v598_v42 = vmul.f32 1.442695, %v556_v53  ;;  %v560_v45 = vsub.f32 %v1737_v33, %v1924_v61 }
 0x192   : > { %1275 = vpow2.f32 %v640_v60  ;;  %v1993_v36 = vadd.f32 %v411_v54, %v410_v43  ;;  %v600_v8 = vmul.f32 1.442695, %v557_v29  ;;  %v561_v48 = vsub.f32 %v1739_v34, %v1924_v61  ;;  %v2327_v34 = vld [vmem:[#allocation14_spill] sm:$0xff]  ;;  %v2328_v60 = vld [vmem:[#allocation15_spill] sm:$0xff] }
 0x193   : > { %v1976_v25 = vpop.eup %1257  ;;  %1277 = vpow2.f32 %v586_v6  ;;  %vm382_vm6 = vcmp.eq.s32.totalorder %v1821_v32, %v1979_v27  ;;  %v602_v50 = vmul.f32 1.442695, %v558_v28  ;;  %v562_v33 = vsub.f32 %v1759_v46, %v1924_v61 }
 0x194   : > { %v1983_v30 = vpop.eup %1259  ;;  %1279 = vpow2.f32 %v588_v1  ;;  %v604_v51 = vmul.f32 1.442695, %v559_v38  ;;  %v563_v18 = vsub.f32 %v1761_v47, %v1924_v61  ;;  %v564_v52 = vsub.f32 %v2327_v34, %v1924_v61 }
 0x195   : > { %v1262_v23 = vpop.eup %1261  ;;  %v681_v40 = vadd.f32 %v1983_v30, %v1976_v25  ;;  %1281 = vpow2.f32 %v590_v13  ;;  %v606_v59 = vmul.f32 1.442695, %v560_v45  ;;  %v565_v3 = vsub.f32 %v2328_v60, %v1924_v61  ;;  %v2330_v45 = vld [vmem:[#allocation17_spill] sm:$0xff] }
 0x196   : > { %v1264_v7 = vpop.eup %1263  ;;  %1283 = vpow2.f32 %v592_v26  ;;  %v608_v62 = vmul.f32 1.442695, %v561_v48  ;;  %v566_v1 = vsub.f32 %v1775_v56, %v1924_v61  ;;  %v610_v43 = vmul.f32 1.442695, %v562_v33 }
 0x197   : > { %v1997_v49 = vpop.eup %1265  ;;  %682 = vadd.xlane.f32.xlu0 %v681_v40  ;;  %v642_v37 = vadd.f32 %v1264_v7, %v1262_v23  ;;  %1285 = vpow2.f32 %v594_v14  ;;  %v612_v26 = vmul.f32 1.442695, %v563_v18  ;;  %v614_v54 = vmul.f32 1.442695, %v564_v52 }
 0x198   : > { %v2003_v17 = vpop.eup %1267  ;;  %1287 = vpow2.f32 %v596_v35  ;;  %v567_v29 = vsub.f32 %v1777_v57, %v1924_v61  ;;  %v616_v28 = vmul.f32 1.442695, %v565_v3  ;;  %v2329_v35 = vld [vmem:[#allocation16_spill] sm:$0xff]  ;;  %v571_v18 = vsub.f32 %v1793_v5, %v1924_v61 }
 0x199   : > { %v1270_v55 = vpop.eup %1269  ;;  %643 = vadd.xlane.f32.xlu1 %v642_v37  ;;  %v684_v58 = vadd.f32 %v2003_v17, %v1997_v49  ;;  %1289 = vpow2.f32 %v598_v42  ;;  %v568_v38 = vsub.f32 %v2329_v35, %v1924_v61  ;;  %v618_v42 = vmul.f32 1.442695, %v566_v1 }
 0x19a   : > { %v1272_v6 = vpop.eup %1271  ;;  %v753_v4 = vadd.f32 %v1270_v55, %v1262_v23  ;;  %1291 = vpow2.f32 %v600_v8  ;;  %v570_v37 = vsub.f32 %v1791_v2, %v1924_v61  ;;  %vm383_vm7 = vcmp.eq.s32.totalorder %v1830_v41, %v1979_v27 }
 0x19b   : > { %v2015_v12 = vpop.eup %1273  ;;  %685 = vadd.xlane.f32.xlu0 %v684_v58  ;;  %v645_v19 = vadd.f32 %v1272_v6, %v1270_v55  ;;  %v774_v13 = vadd.f32 %v1272_v6, %v1264_v7  ;;  %1293 = vpow2.f32 %v602_v50  ;;  %v569_v7 = vsub.f32 %v2330_v45, %v1924_v61 }
 0x19c   : > { %v2017_v53 = vpop.eup %1275  ;;  %1295 = vpow2.f32 %v604_v51  ;;  %v620_v51 = vmul.f32 1.442695, %v567_v29  ;;  %v622_v58 = vmul.f32 1.442695, %v568_v38  ;;  %v414_v2 = vsel %vm382_vm6, %v1807_v20, 0.0 }
 0x19d   : > { %v1278_v14 = vpop.eup %1277  ;;  %646 = vadd.xlane.f32.xlu1 %v645_v19  ;;  %v687_v56 = vadd.f32 %v2017_v53, %v2015_v12  ;;  %1297 = vpow2.f32 %v606_v59  ;;  %v624_v6 = vmul.f32 1.442695, %v569_v7  ;;  %v415_v19 = vsel %vm383_vm7, %v1809_v21, 0.0 }
 0x19e   : > { %v1280_v23 = vpop.eup %1279  ;;  %v754_v40 = vadd.f32 %v1278_v14, %v753_v4  ;;  %1299 = vpow2.f32 %v608_v62  ;;  %v626_v62 = vmul.f32 1.442695, %v570_v37 }
 0x19f   : > { %v1282_v8 = vpop.eup %1281  ;;  %688 = vadd.xlane.f32.xlu0 %v687_v56  ;;  %v648_v57 = vadd.f32 %v1280_v23, %v1278_v14  ;;  %v775_v48 = vadd.f32 %v1280_v23, %v774_v13  ;;  %1301 = vpow2.f32 %v610_v43  ;;  %v628_v43 = vmul.f32 1.442695, %v571_v18 }
 0x1a0   : > { %v1284_v50 = vpop.eup %1283  ;;  %v755_v33 = vadd.f32 %v1282_v8, %v754_v40  ;;  %1303 = vpow2.f32 %v612_v26  ;;  %v460_v14 = vadd.f32 %v415_v19, %v414_v2 }
 0x1a1   : > { %v1286_v52 = vpop.eup %1285  ;;  %649 = vadd.xlane.f32.xlu1 %v648_v57  ;;  %v776_v55 = vadd.f32 %v1284_v50, %v775_v48  ;;  %1305 = vpow2.f32 %v614_v54  ;;  %v651_v5 = vadd.f32 %v1284_v50, %v1282_v8 }
 0x1a2   : > { %v1288_v59 = vpop.eup %1287  ;;  %v756_v3 = vadd.f32 %v1286_v52, %v755_v33  ;;  %1307 = vpow2.f32 %v616_v28 }
 0x1a3   : > { %v1290_v4 = vpop.eup %1289  ;;  %449 = vadd.xlane.f32.xlu0 %v1985_v22  ;;  %v777_v61 = vadd.f32 %v1288_v59, %v776_v55  ;;  %1309 = vpow2.f32 %v618_v42  ;;  %v654_v22 = vadd.f32 %v1288_v59, %v1286_v52 }
 0x1a4   : > { %v1292_v1 = vpop.eup %1291  ;;  %v757_v13 = vadd.f32 %v1290_v4, %v756_v3  ;;  %1311 = vpow2.f32 %v620_v51 }
 0x1a5   : > { %v1294_v26 = vpop.eup %1293  ;;  %652 = vadd.xlane.f32.xlu1 %v651_v5  ;;  %v778_v54 = vadd.f32 %v1292_v1, %v777_v61  ;;  %1313 = vpow2.f32 %v622_v58  ;;  %v657_v8 = vadd.f32 %v1292_v1, %v1290_v4 }
 0x1a6   : > { %v1296_v20 = vpop.eup %1295  ;;  %v758_v27 = vadd.f32 %v1294_v26, %v757_v13  ;;  %1315 = vpow2.f32 %v624_v6 }
 0x1a7   : > { %v1298_v29 = vpop.eup %1297  ;;  %455 = vadd.xlane.f32.xlu0 %v1993_v36  ;;  %v779_v56 = vadd.f32 %v1296_v20, %v778_v54  ;;  %1317 = vpow2.f32 %v626_v62  ;;  %v660_v52 = vadd.f32 %v1296_v20, %v1294_v26  ;;  %v326_v20 = vadd.s32 64, %v1817_v31 }
 0x1a8   : > { %v1300_v28 = vpop.eup %1299  ;;  %v759_v38 = vadd.f32 %v1298_v29, %v758_v27  ;;  %1319 = vpow2.f32 %v628_v43 }
 0x1a9   : > { %v1302_v21 = vpop.eup %1301  ;;  %655 = vadd.xlane.f32.xlu1 %v654_v22  ;;  %v780_v23 = vadd.f32 %v1300_v28, %v779_v56  ;;  %v663_v61 = vadd.f32 %v1300_v28, %v1298_v29 }
 0x1aa   : > { %v1304_v40 = vpop.eup %1303  ;;  %v760_v42 = vadd.f32 %v1302_v21, %v759_v38 }
 0x1ab   : > { %v1306_v7 = vpop.eup %1305  ;;  %461 = vadd.xlane.f32.xlu0 %v460_v14  ;;  %v781_v57 = vadd.f32 %v1304_v40, %v780_v23  ;;  %v666_v13 = vadd.f32 %v1304_v40, %v1302_v21  ;;  %v329_v40 = vadd.s32 88, %v1817_v31 }
 0x1ac   : > { %v1308_v48 = vpop.eup %1307  ;;  %v761_v37 = vadd.f32 %v1306_v7, %v760_v42 }
 0x1ad   : > { %v1310_v50 = vpop.eup %1309  ;;  %658 = vadd.xlane.f32.xlu1 %v657_v8  ;;  %v782_v36 = vadd.f32 %v1308_v48, %v781_v57  ;;  %v669_v29 = vadd.f32 %v1308_v48, %v1306_v7 }
 0x1ae   : > { %v1312_v33 = vpop.eup %1311  ;;  %v762_v51 = vadd.f32 %v1310_v50, %v761_v37 }
 0x1af   : > { %v1314_v18 = vpop.eup %1313  ;;  %v783_v55 = vadd.f32 %v1312_v33, %v782_v36  ;;  %v672_v28 = vadd.f32 %v1312_v33, %v1310_v50  ;;  %v346_v50 = vadd.s32 %v1825_v39, %v329_v40  ;;  %v331_v36 = vadd.s32 104, %v1817_v31 }
 0x1b0   : > { %v1316_v58 = vpop.eup %1315  ;;  %v763_v59 = vadd.f32 %v1314_v18, %v762_v51 }
 0x1b1   : > { %v1318_v3 = vpop.eup %1317  ;;  %661 = vadd.xlane.f32.xlu1 %v660_v52  ;;  %v784_v2 = vadd.f32 %v1316_v58, %v783_v55  ;;  %v675_v23 = vadd.f32 %v1316_v58, %v1314_v18  ;;  %vm376_vm12 = vcmp.eq.s32.totalorder %v1821_v32, %v346_v50  ;;  %vm377_vm13 = vcmp.eq.s32.totalorder %v1830_v41, %v346_v50 }
 0x1b2   : > { %v1320_v6 = vpop.eup %1319  ;;  %v764_v5 = vadd.f32 %v1318_v3, %v763_v59  ;;  %v333_v52 = vadd.s32 120, %v1817_v31  ;;  %v408_v58 = vsel %vm376_vm12, %v2329_v35, 0.0  ;;  %v409_v59 = vsel %vm377_vm13, %v2330_v45, 0.0 }
 0x1b3   : > { %v785_v4 = vadd.f32 %v1320_v6, %v784_v2  ;;  %v678_v37 = vadd.f32 %v1320_v6, %v1318_v3 }
 0x1b4   : > { %v765_v62 = vadd.f32 %v1976_v25, %v764_v5 }
 0x1b5   : > { %664 = vadd.xlane.f32.xlu1 %v663_v61  ;;  %v786_v1 = vadd.f32 %v1983_v30, %v785_v4  ;;  %v343_v30 = vadd.s32 %v1825_v39, %v326_v20 }
 0x1b6   : > { %v766_v19 = vadd.f32 %v1997_v49, %v765_v62  ;;  %v327_v49 = vadd.s32 72, %v1817_v31 }
 0x1b7   : > { %v787_v43 = vadd.f32 %v2003_v17, %v786_v1  ;;  %vm370_vm8 = vcmp.eq.s32.totalorder %v1821_v32, %v343_v30  ;;  %vm371_vm9 = vcmp.eq.s32.totalorder %v1830_v41, %v343_v30  ;;  %v426_v1 = vpop.xlane.xlu0 %425 }
 0x1b8   : > { %v767_v26 = vadd.f32 %v2015_v12, %v766_v19  ;;  %v402_v57 = vsel %vm370_vm8, %v1759_v46, 0.0  ;;  %v403_v48 = vsel %vm371_vm9, %v1761_v47, 0.0  ;;  %v348_v47 = vadd.s32 %v1825_v39, %v331_v36 }
 0x1b9   : > { %667 = vadd.xlane.f32.xlu1 %v666_v13  ;;  %v788_v54 = vadd.f32 %v2017_v53, %v787_v43  ;;  %v344_v53 = vadd.s32 %v1825_v39, %v327_v49  ;;  %v442_v51 = vadd.f32 %v403_v48, %v402_v57 }
 0x1ba   : > { %v768_v27 = vrot.slane %v767_v26, 4  ;;  %vm380_vm14 = vcmp.eq.s32.totalorder %v1821_v32, %v348_v47  ;;  %vm381_vm15 = vcmp.eq.s32.totalorder %v1830_v41, %v348_v47 }
 0x1bb   : > { %v789_v22 = vrot.slane %v788_v54, 4  ;;  %vm372_vm10 = vcmp.eq.s32.totalorder %v1821_v32, %v344_v53  ;;  %vm373_vm11 = vcmp.eq.s32.totalorder %v1830_v41, %v344_v53  ;;  %v412_v3 = vsel %vm380_vm14, %v1785_v63, 0.0 }
 0x1bc   : > { %v769_v14 = vadd.f32 %v768_v27, %v767_v26  ;;  %v404_v18 = vsel %vm372_vm10, %v2327_v34, 0.0  ;;  %v405_v46 = vsel %vm373_vm11, %v2328_v60, 0.0  ;;  %v350_v34 = vadd.s32 %v1825_v39, %v333_v52  ;;  %v835_v52 = vld [vmem:[#allocation3 + $0x70] sm:$0xff] }
 0x1bd   : > { %670 = vadd.xlane.f32.xlu1 %v669_v29  ;;  %v790_v25 = vadd.f32 %v789_v22, %v788_v54  ;;  %v445_v55 = vadd.f32 %v405_v46, %v404_v18  ;;  %v451_v60 = vadd.f32 %v409_v59, %v408_v58  ;;  %v413_v2 = vsel %vm381_vm15, %v1787_v0, 0.0 }
 0x1be   : > { %v770_v56 = vrot.slane %v769_v14, 2  ;;  %vm384_vm0 = vcmp.eq.s32.totalorder %v1821_v32, %v350_v34  ;;  %vm385_vm2 = vcmp.eq.s32.totalorder %v1830_v41, %v350_v34  ;;  %v457_v35 = vadd.f32 %v413_v2, %v412_v3 }
 0x1bf   : > { %v791_v17 = vrot.slane %v790_v25, 2  ;;  %v416_v45 = vsel %vm384_vm0, %v1801_v15, 0.0  ;;  %v417_v6 = vsel %vm385_vm2, %v1803_v16, 0.0  ;;  %v740_v39 = vsub.f32 %v1846_v10, %v1854_v24  ;;  %v420_v15 = vpop.xlane.xlu1 %419 }
 0x1c0   : > { %v771_v38 = vadd.f32 %v770_v56, %v769_v14  ;;  %v463_v5 = vadd.f32 %v417_v6, %v416_v45  ;;  %v2331_v0 = vlaneseq  ;;  %v837_v30 = vmul.f32 2.0, %v420_v15 }
 0x1c1   : > { %673 = vadd.xlane.f32.xlu1 %v672_v28  ;;  %v792_v12 = vadd.f32 %v791_v17, %v790_v25  ;;  %v741_v63 = vmul.f32 1.442695, %v740_v39  ;;  %v821_v17 = vld [vmem:[#allocation3] sm:$0xff] }
 0x1c2   : > { %v772_v21 = vrot.slane %v771_v38, 1  ;;  %vm2086_vm3 = vcmp.lt.s32.totalorder %v2331_v0, 256 }
 0x1c3   : > { %v793_v42 = vrot.slane %v792_v12, 1  ;;  %1321 = vpow2.f32 %v741_v63  ;;  %234 = vst.msk [vmem:[%s2090_s8] sm:$0x3] %vm2086_vm3, %v1534_v9  ;;  %v423_v16 = vpop.xlane.xlu1 %422 }
 0x1c4   : > { %v2053_v7 = vadd.f32 %v772_v21, %v771_v38 }
 0x1c5   : > { %676 = vadd.xlane.f32.xlu1 %v675_v23  ;;  %v2055_v8 = vadd.f32 %v793_v42, %v792_v12  ;;  %v838_v23 = vmul.f32 2.0, %v423_v16 }
 0x1c7   : > { %v797_v33 = vcombine.low %v2053_v7, %v2055_v8  ;;  %v429_v41 = vpop.xlane.xlu1 %428 }
 0x1c8   : > { %v840_v6 = vmul.f32 2.0, %v429_v41 }
 0x1c9   : > { %679 = vadd.xlane.f32.xlu1 %v678_v37  ;;  %v822_v37 = vld [vmem:[#allocation3 + $0x8] sm:$0xff] }
 0x1cb   : > { %v2096_v10 = vpop.xlane.xlu1 %431 }
 0x1cd   : > { %443 = vadd.xlane.f32.xlu1 %v442_v51  ;;  %v1322_v61 = vpop.eup %1321  ;;  %v839_v51 = vmul.f32 2.0, %v426_v1  ;;  %v841_v1 = vmul.f32 2.0, %v2096_v10 }
 0x1cf   : > { %v2098_v4 = vpop.xlane.xlu1 %434 }
 0x1d1   : > { %446 = vadd.xlane.f32.xlu1 %v445_v55 }
 0x1d3   : > { %v2100_v62 = vpop.xlane.xlu1 %437 }
 0x1d5   : > { %452 = vadd.xlane.f32.xlu1 %v451_v60  ;;  %v823_v60 = vld [vmem:[#allocation3 + $0x10] sm:$0xff] }
 0x1d7   : > { %v2102_v19 = vpop.xlane.xlu1 %440 }
 0x1d9   : > { %458 = vadd.xlane.f32.xlu1 %v457_v35 }
 0x1dd   : > { %464 = vadd.xlane.f32.xlu1 %v463_v5 }
 0x1ee   : > { %745 = vperm.xlu1 %1256, %v1322_v61   ;;  %v824_v61 = vld [vmem:[#allocation3 + $0x18] sm:$0xff] }
 0x224   : > { %v2104_v13 = vpop.xlane.xlu0 %682 }
 0x226   : > { %v644_v43 = vpop.xlane.xlu1 %643 }
 0x227   : > { %1323 = vlog2.f32 %v644_v43 }
 0x228   : > { %v686_v26 = vpop.xlane.xlu0 %685 }
 0x229   : > { %1325 = vlog2.f32 %v686_v26 }
 0x22a   : > { %v647_v54 = vpop.xlane.xlu1 %646 }
 0x22b   : > { %1327 = vlog2.f32 %v647_v54 }
 0x22c   : > { %v2106_v9 = vpop.xlane.xlu0 %688 }
 0x22e   : > { %v650_v20 = vpop.xlane.xlu1 %649 }
 0x22f   : > { %1329 = vlog2.f32 %v650_v20  ;;  %v825_v20 = vld [vmem:[#allocation3 + $0x20] sm:$0xff] }
 0x230   : > { %v2108_v27 = vpop.xlane.xlu0 %449 }
 0x231   : > { %v1324_v29 = vpop.eup %1323 }
 0x232   : > { %v691_v22 = vmul.f32 0.6931472, %v1324_v29  ;;  %v653_v14 = vpop.xlane.xlu1 %652 }
 0x233   : > { %v1326_v25 = vpop.eup %1325  ;;  %1331 = vlog2.f32 %v653_v14  ;;  %v842_v14 = vmul.f32 2.0, %v2098_v4 }
 0x234   : > { %v723_v49 = vadd.f32 %v691_v22, %v1861_v44  ;;  %v2111_v56 = vpop.xlane.xlu0 %455  ;;  %v719_v38 = vmul.f32 0.6931472, %v1326_v25 }
 0x235   : > { %v1328_v28 = vpop.eup %1327 }
 0x236   : > { %v853_v12 = vsub.f32 %v723_v49, %v837_v30  ;;  %v693_v53 = vmul.f32 0.6931472, %v1328_v28  ;;  %v656_v21 = vpop.xlane.xlu1 %655  ;;  %v737_v50 = vadd.f32 %v719_v38, %v1861_v44  ;;  %v826_v28 = vld [vmem:[#allocation3 + $0x28] sm:$0xff] }
 0x237   : > { %1333 = vlog2.f32 %v656_v21 }
 0x238   : > { %v869_v40 = vadd.f32 %v853_v12, %v821_v17  ;;  %v724_v42 = vadd.f32 %v693_v53, %v1861_v44  ;;  %v462_v57 = vpop.xlane.xlu0 %461  ;;  %v843_v12 = vmul.f32 2.0, %v2100_v62 }
 0x239   : > { %v1330_v48 = vpop.eup %1329  ;;  %v851_v36 = vmul.f32 2.0, %v462_v57 }
 0x23a   : > { %886 = vst.msk [vmem:[#allocation3] sm:$0xff] %vm235_vm1, %v869_v40  ;;  %v854_v18 = vsub.f32 %v724_v42, %v838_v23  ;;  %v695_v46 = vmul.f32 0.6931472, %v1330_v48  ;;  %v659_v47 = vpop.xlane.xlu1 %658  ;;  %v827_v40 = vld [vmem:[#allocation3 + $0x30] sm:$0xff]  ;;  %v844_v48 = vmul.f32 2.0, %v2102_v19 }
 0x23b   : > { %1335 = vlog2.f32 %v659_v47  ;;  %v867_v55 = vsub.f32 %v737_v50, %v851_v36  ;;  %v828_v36 = vld [vmem:[#allocation3 + $0x38] sm:$0xff] }
 0x23c   : > { %v870_v58 = vadd.f32 %v854_v18, %v822_v37  ;;  %v725_v59 = vadd.f32 %v695_v46, %v1861_v44 }
 0x23d   : > { %v1332_v34 = vpop.eup %1331  ;;  %v883_v3 = vadd.f32 %v867_v55, %v835_v52 }
 0x23e   : > { %887 = vst.msk [vmem:[#allocation3 + $0x8] sm:$0xff] %vm235_vm1, %v870_v58  ;;  %v855_v2 = vsub.f32 %v725_v59, %v839_v51  ;;  %v697_v35 = vmul.f32 0.6931472, %v1332_v34  ;;  %v662_v45 = vpop.xlane.xlu1 %661  ;;  %v847_v59 = vmul.f32 2.0, %v2108_v27 }
 0x23f   : > { %900 = vst.msk [vmem:[#allocation3 + $0x70] sm:$0xff] %vm235_vm1, %v883_v3  ;;  %1337 = vlog2.f32 %v662_v45 }
 0x240   : > { %v871_v5 = vadd.f32 %v855_v2, %v823_v60  ;;  %v726_v39 = vadd.f32 %v697_v35, %v1861_v44 }
 0x241   : > { %v1334_v63 = vpop.eup %1333  ;;  %v905_v3 = vld [vmem:[#allocation3] sm:$0xff] }
 0x242   : > { %888 = vst.msk [vmem:[#allocation3 + $0x10] sm:$0xff] %vm235_vm1, %v871_v5  ;;  %v856_v0 = vsub.f32 %v726_v39, %v840_v6  ;;  %v699_v15 = vmul.f32 0.6931472, %v1334_v63  ;;  %v665_v16 = vpop.xlane.xlu1 %664  ;;  %v829_v63 = vld [vmem:[#allocation3 + $0x40] sm:$0xff] }
 0x243   : > { %1339 = vlog2.f32 %v665_v16 }
 0x244   : > { %v872_v43 = vadd.f32 %v856_v0, %v824_v61  ;;  %v727_v26 = vadd.f32 %v699_v15, %v1861_v44  ;;  %v831_v0 = vld [vmem:[#allocation3 + $0x50] sm:$0xff] }
 0x245   : > { %v1336_v54 = vpop.eup %1335  ;;  %v906_v19 = vld [vmem:[#allocation3 + $0x8] sm:$0xff] }
 0x246   : > { %889 = vst.msk [vmem:[#allocation3 + $0x18] sm:$0xff] %vm235_vm1, %v872_v43  ;;  %v857_v41 = vsub.f32 %v727_v26, %v841_v1  ;;  %v701_v29 = vmul.f32 0.6931472, %v1336_v54  ;;  %v668_v22 = vpop.xlane.xlu1 %667  ;;  %v922_v5 = vsel %vm235_vm1, %v906_v19, 0.0 }
 0x247   : > { %1341 = vlog2.f32 %v668_v22 }
 0x248   : > { %v873_v25 = vadd.f32 %v857_v41, %v825_v20  ;;  %v728_v30 = vadd.f32 %v701_v29, %v1861_v44 }
 0x249   : > { %v1338_v49 = vpop.eup %1337  ;;  %v907_v2 = vld [vmem:[#allocation3 + $0x10] sm:$0xff] }
 0x24a   : > { %890 = vst.msk [vmem:[#allocation3 + $0x20] sm:$0xff] %vm235_vm1, %v873_v25  ;;  %v858_v10 = vsub.f32 %v728_v30, %v842_v14  ;;  %v703_v17 = vmul.f32 0.6931472, %v1338_v49  ;;  %v671_v38 = vpop.xlane.xlu1 %670  ;;  %v924_v27 = vsel %vm235_vm1, %v907_v2, 0.0  ;;  %v830_v30 = vld [vmem:[#allocation3 + $0x48] sm:$0xff] }
 0x24b   : > { %1343 = vlog2.f32 %v671_v38  ;;  %v1535_v38 = vmov 1966171168  }
 0x24c   : > { %v874_v53 = vadd.f32 %v858_v10, %v826_v28  ;;  %v729_v21 = vadd.f32 %v703_v17, %v1861_v44 }
 0x24d   : > { %v1340_v23 = vpop.eup %1339  ;;  %v908_v6 = vld [vmem:[#allocation3 + $0x18] sm:$0xff] }
 0x24e   : > { %891 = vst.msk [vmem:[#allocation3 + $0x28] sm:$0xff] %vm235_vm1, %v874_v53  ;;  %v859_v4 = vsub.f32 %v729_v21, %v843_v12  ;;  %v705_v42 = vmul.f32 0.6931472, %v1340_v23  ;;  %v674_v57 = vpop.xlane.xlu1 %673  ;;  %v926_v54 = vsel %vm235_vm1, %v908_v6, 0.0  ;;  %v799_v12 = vunpack.c.l.s4 %v1535_v38  ;;  %v834_v6 = vld [vmem:[#allocation3 + $0x68] sm:$0xff] }
 0x24f   : > { %1345 = vlog2.f32 %v674_v57  ;;  %v849_v23 = vmul.f32 2.0, %v2111_v56 }
 0x250   : > { %v875_v37 = vadd.f32 %v859_v4, %v827_v40  ;;  %v730_v50 = vadd.f32 %v705_v42, %v1861_v44 }
 0x251   : > { %v1342_v18 = vpop.eup %1341  ;;  %v909_v43 = vld [vmem:[#allocation3 + $0x20] sm:$0xff] }
 0x252   : > { %892 = vst.msk [vmem:[#allocation3 + $0x30] sm:$0xff] %vm235_vm1, %v875_v37  ;;  %v860_v62 = vsub.f32 %v730_v50, %v844_v48  ;;  %v677_v51 = vpop.xlane.xlu1 %676  ;;  %v707_v52 = vmul.f32 0.6931472, %v1342_v18  ;;  %v928_v53 = vsel %vm235_vm1, %v909_v43, 0.0  ;;  %v832_v18 = vld [vmem:[#allocation3 + $0x58] sm:$0xff] }
 0x253   : > { %1347 = vlog2.f32 %v677_v51  ;;  %v836_v43 = vld [vmem:[#allocation3 + $0x78] sm:$0xff] }
 0x254   : > { %v876_v46 = vadd.f32 %v860_v62, %v828_v36  ;;  %1349 = vlog2.f32 %v2104_v13  ;;  %v731_v45 = vadd.f32 %v707_v52, %v1861_v44  ;;  %v833_v52 = vld [vmem:[#allocation3 + $0x60] sm:$0xff] }
 0x255   : > { %v1344_v55 = vpop.eup %1343  ;;  %v910_v49 = vld [vmem:[#allocation3 + $0x28] sm:$0xff] }
 0x256   : > { %893 = vst.msk [vmem:[#allocation3 + $0x38] sm:$0xff] %vm235_vm1, %v876_v46  ;;  %v680_v47 = vpop.xlane.xlu1 %679  ;;  %v709_v35 = vmul.f32 0.6931472, %v1344_v55  ;;  %v930_v36 = vsel %vm235_vm1, %v910_v49, 0.0  ;;  %v800_v55 = vunpack.c.0.s8 %v799_v12 }
 0x257   : > { %1351 = vlog2.f32 %v680_v47 }
 0x258   : > { %1353 = vlog2.f32 %v2106_v9  ;;  %v921_v9 = vsel %vm235_vm1, %v905_v3, 0.0  ;;  %v732_v22 = vadd.f32 %v709_v35, %v1861_v44 }
 0x259   : > { %v1346_v58 = vpop.eup %1345  ;;  %v923_v26 = vadd.f32 %v922_v5, %v921_v9  ;;  %v911_v42 = vld [vmem:[#allocation3 + $0x30] sm:$0xff] }
 0x25a   : > { %v711_v34 = vmul.f32 0.6931472, %v1346_v58  ;;  %v444_v60 = vpop.xlane.xlu1 %443  ;;  %v932_v19 = vsel %vm235_vm1, %v911_v42, 0.0 }
 0x25b   : > { %v845_v13 = vmul.f32 2.0, %v444_v60  ;;  %v925_v28 = vadd.f32 %v924_v27, %v923_v26 }
 0x25c   : > { %v733_v39 = vadd.f32 %v711_v34, %v1861_v44 }
 0x25d   : > { %v1348_v61 = vpop.eup %1347  ;;  %v861_v15 = vsub.f32 %v731_v45, %v845_v13  ;;  %v927_v57 = vadd.f32 %v926_v54, %v925_v28  ;;  %v912_v46 = vld [vmem:[#allocation3 + $0x38] sm:$0xff] }
 0x25e   : > { %v863_v16 = vsub.f32 %v733_v39, %v847_v59  ;;  %v447_v1 = vpop.xlane.xlu1 %446  ;;  %v1350_v20 = vpop.eup %1349  ;;  %v713_v41 = vmul.f32 0.6931472, %v1348_v61  ;;  %v934_v45 = vsel %vm235_vm1, %v912_v46, 0.0  ;;  %v803_v61 = vsub.s32 %v800_v55, %v1817_v31 }
 0x25f   : > { %v877_v29 = vadd.f32 %v861_v15, %v829_v63  ;;  %v846_v14 = vmul.f32 2.0, %v447_v1  ;;  %v717_v21 = vmul.f32 0.6931472, %v1350_v20  ;;  %v929_v47 = vadd.f32 %v928_v53, %v927_v57 }
 0x260   : > { %v879_v25 = vadd.f32 %v863_v16, %v831_v0  ;;  %v734_v37 = vadd.f32 %v713_v41, %v1861_v44  ;;  %v804_v31 = vrot.slane %v797_v33, %v803_v61 }
 0x261   : > { %v1352_v10 = vpop.eup %1351  ;;  %894 = vst.msk [vmem:[#allocation3 + $0x40] sm:$0xff] %vm235_vm1, %v877_v29  ;;  %v862_v17 = vsub.f32 %v732_v22, %v846_v14  ;;  %v736_v34 = vadd.f32 %v717_v21, %v1861_v44  ;;  %v931_v60 = vadd.f32 %v930_v36, %v929_v47  ;;  %v739_v22 = vld [vmem:[%s2090_s8] sm:$0x3] }
 0x262   : > { %896 = vst.msk [vmem:[#allocation3 + $0x50] sm:$0xff] %vm235_vm1, %v879_v25  ;;  %v715_v40 = vmul.f32 0.6931472, %v1352_v10  ;;  %v453_v4 = vpop.xlane.xlu1 %452  ;;  %v1354_v62 = vpop.eup %1353 }
 0x263   : > { %v878_v48 = vadd.f32 %v862_v17, %v830_v30  ;;  %v848_v50 = vmul.f32 2.0, %v453_v4  ;;  %v721_v3 = vmul.f32 0.6931472, %v1354_v62  ;;  %v933_v39 = vadd.f32 %v932_v19, %v931_v60 }
 0x264   : > { %v735_v51 = vadd.f32 %v715_v40, %v1861_v44  ;;  %v811_v17 = vrot.slane %v804_v31, %v803_v61 }
 0x265   : > { %895 = vst.msk [vmem:[#allocation3 + $0x48] sm:$0xff] %vm235_vm1, %v878_v48  ;;  %v864_v56 = vsub.f32 %v734_v37, %v848_v50  ;;  %v935_v9 = vadd.f32 %v934_v45, %v933_v39  ;;  %v738_v16 = vadd.f32 %v721_v3, %v1861_v44 }
 0x266   : > { %v865_v58 = vsub.f32 %v735_v51, %v849_v23  ;;  %v459_v59 = vpop.xlane.xlu1 %458  ;;  %v919_v23 = vld [vmem:[#allocation3 + $0x70] sm:$0xff] }
 0x267   : > { %v880_v2 = vadd.f32 %v864_v56, %v832_v18  ;;  %v850_v35 = vmul.f32 2.0, %v459_v59  ;;  %v948_v57 = vsel %vm235_vm1, %v919_v23, 0.0 }
 0x268   : > { %v881_v13 = vadd.f32 %v865_v58, %v833_v52  ;;  %v913_v5 = vld [vmem:[#allocation3 + $0x40] sm:$0xff] }
 0x269   : > { %897 = vst.msk [vmem:[#allocation3 + $0x58] sm:$0xff] %vm235_vm1, %v880_v2  ;;  %v866_v63 = vsub.f32 %v736_v34, %v850_v35  ;;  %v936_v0 = vsel %vm235_vm1, %v913_v5, 0.0  ;;  %v915_v54 = vld [vmem:[#allocation3 + $0x50] sm:$0xff] }
 0x26a   : > { %898 = vst.msk [vmem:[#allocation3 + $0x60] sm:$0xff] %vm235_vm1, %v881_v13  ;;  %v465_v15 = vpop.xlane.xlu1 %464  ;;  %v937_v20 = vadd.f32 %v936_v0, %v935_v9  ;;  %v940_v49 = vsel %vm235_vm1, %v915_v54, 0.0 }
 0x26b   : > { %v882_v27 = vadd.f32 %v866_v63, %v834_v6  ;;  %v852_v1 = vmul.f32 2.0, %v465_v15 }
 0x26c   : > { %v914_v26 = vld [vmem:[#allocation3 + $0x48] sm:$0xff] }
 0x26d   : > { %899 = vst.msk [vmem:[#allocation3 + $0x68] sm:$0xff] %vm235_vm1, %v882_v27  ;;  %v868_v41 = vsub.f32 %v738_v16, %v852_v1  ;;  %v938_v29 = vsel %vm235_vm1, %v914_v26, 0.0 }
 0x26e   : > { %v746_v14 = vpop.permute.xlu1 %745  ;;  %v939_v25 = vadd.f32 %v938_v29, %v937_v20 }
 0x26f   : > { %v884_v30 = vadd.f32 %v868_v41, %v836_v43  ;;  %v751_v44 = vrot.slane %v746_v14, %v1850_v11 }
 0x270   : > { %v916_v28 = vld [vmem:[#allocation3 + $0x58] sm:$0xff]  ;;  %v941_v10 = vadd.f32 %v940_v49, %v939_v25 }
 0x271   : > { %901 = vst.msk [vmem:[#allocation3 + $0x78] sm:$0xff] %vm235_vm1, %v884_v30  ;;  %v752_v38 = vmul.f32 %v751_v44, %v739_v22  ;;  %v917_v12 = vld [vmem:[#allocation3 + $0x60] sm:$0xff]  ;;  %v942_v7 = vsel %vm235_vm1, %v916_v28, 0.0 }
 0x272   : > { %v943_v8 = vadd.f32 %v942_v7, %v941_v10  ;;  %v944_v33 = vsel %vm235_vm1, %v917_v12, 0.0 }
 0x273   : > { %v813_v53 = vadd.f32 %v811_v17, %v752_v38 }
 0x274   : > { %v918_v21 = vld [vmem:[#allocation3 + $0x68] sm:$0xff]  ;;  %v945_v40 = vadd.f32 %v944_v33, %v943_v8 }
 0x275   : > { %818 = vst.msk [vmem:[%s2090_s8] sm:$0x3] %vm2086_vm3, %v813_v53  ;;  %v946_v4 = vsel %vm235_vm1, %v918_v21, 0.0  ;;  %s1536_s8 = smov [#allocation8]  }
 0x276   : > { %v947_v42 = vadd.f32 %v946_v4, %v945_v40  ;;  %s1389_s11 = sshll.u32 %s1536_s8, 4  ;;  %s1390_s11 = int_to_ptr.vmem [resolvable:$false] %s1389_s11 }
 0x277   : > { %s1391_s21 = scalar_lea.vmem %s1390_s11, 32  ;;  %p1392_p6 = scmp.lt.s32.totalorder %s2191_s4, %s1390_s11 }
 0x278   : > { %v920_v48 = vld [vmem:[#allocation3 + $0x78] sm:$0xff]  ;;  %v949_v37 = vadd.f32 %v948_v57, %v947_v42  ;;  %p1393_p13 = scmp.lt.s32.totalorder %s1391_s21, %s1385_s6 }
 0x279   : > { %v950_v50 = vsel %vm235_vm1, %v920_v48, 0.0 }
 0x27a   : > { %v951_v36 = vadd.f32 %v950_v50, %v949_v37  ;;  %p1394_p2 = por %p1393_p13, %p1392_p6 }
 0x27c   : > { %952 = vadd.xlane.f32.xlu0 %v951_v36  ;;  %p1395_p5 = pnand %p1394_p2, %p1388_p0 }
 0x292   : > { %964 = vperm.xlu0 %1255, %v1854_v24  }
 0x309   : > { %v953_v32 = vpop.xlane.xlu0 %952 }
 0x30a   : > { %v954_v62 = vrot.slane %v953_v32, 4 }
 0x30c   : > { %v955_v51 = vadd.f32 %v954_v62, %v953_v32 }
 0x30e   : > { %v956_v18 = vrot.slane %v955_v51, 2 }
 0x310   : > { %v957_v46 = vadd.f32 %v956_v18, %v955_v51 }
 0x311   : > { %v965_v47 = vpop.permute.xlu0 %964 }
 0x312   : > { %v970_v52 = vrot.slane %v965_v47, %v1850_v11  ;;  %v958_v56 = vrot.slane %v957_v46, 1 }
 0x314   : > { %971 = vst [vmem:[%s213_s28] sm:$0x1] %v970_v52  ;;  %v959_v11 = vadd.f32 %v958_v56, %v957_v46 }
 0x315   : > { %1398 = shalt.err (!%p1395_p5)
}
 0x316   : > { %s1399_s9 = scalar_lea.hbm %s2189_s22, 16  ;;  %s1403_s18 = scalar_lea.hbm %s2305_s2, 32 }
 0x317   : > { %p1400_p4 = scmp.ne.s32.totalorder %s2189_s22, %s1399_s9  ;;  %p1404_p12 = scmp.lt.u32.totalorder %s2189_s22, %s2305_s2 }
 0x318   : > { %p1405_p1 = scmp.lt.u32.totalorder %s1403_s18, %s1399_s9  ;;  %p1407_p8 = scmp.lt.u32.totalorder %s1399_s9, %s2189_s22 }
 0x319   : > { %p1401_p7 = pnand %p1400_p4, %p2334_p9 }
 0x31a   : > { %p1406_p3 = por %p1405_p1, %p1404_p12 }
 0x31b   : > { %p1402_p10 = pneg %p1401_p7 }
 0x31c   : > { %p1408_p11 = por %p1407_p8, %p1406_p3 }
 0x31e   : > { %p1409_p0 = pnand %p1408_p11, %p1402_p10 }
 0x320   : > { %1412 = shalt.err (!%p1409_p0)
}
 0x321   : > { %1180 = dma.vmem_to_hbm [thread:$0]  (%p2334_p9), %s2191_s4, 16, %s2189_s22, %s2200_s24   ;;  %1175 = vpush %v959_v11 }
 0x322   : > { %s1413_s6 = scalar_lea.vmem %s2198_s7, 32  ;;  %s1537_s11 = smov [#allocation10]  }
 0x323   : > { %p1414_p6 = scmp.ne.s32.totalorder %s2198_s7, %s1413_s6  ;;  %s1417_s21 = sshll.u32 %s1537_s11, 4  ;;  %s1418_s21 = int_to_ptr.vmem [resolvable:$false] %s1417_s21 }
 0x324   : > { %s1419_s9 = scalar_lea.vmem %s1418_s21, 64  ;;  %p1420_p5 = scmp.lt.s32.totalorder %s2198_s7, %s1418_s21 }
 0x325   : > { %p1415_p13 = pnand %p1414_p6, %p2334_p9  ;;  %p1421_p4 = scmp.lt.s32.totalorder %s1419_s9, %s1413_s6 }
 0x327   : > { %p1416_p2 = pneg %p1415_p13  ;;  %p1422_p7 = por %p1421_p4, %p1420_p5 }
 0x329   : > { %p1423_p10 = pnand %p1422_p7, %p1416_p2 }
 0x32b   : > { %1426 = shalt.err (!%p1423_p10)
}
 0x32c   : > { %s1427_s4 = scalar_lea.hbm %s2196_s30, 32  ;;  %s1431_s5 = scalar_lea.hbm %s2306_s3, 64 }
 0x32d   : > { %p1428_p12 = scmp.ne.s32.totalorder %s2196_s30, %s1427_s4  ;;  %p1432_p8 = scmp.lt.u32.totalorder %s2196_s30, %s2306_s3 }
 0x32e   : > { %p1433_p11 = scmp.lt.u32.totalorder %s1431_s5, %s1427_s4  ;;  %p1435_p6 = scmp.lt.u32.totalorder %s1427_s4, %s2196_s30 }
 0x32f   : > { %p1429_p1 = pnand %p1428_p12, %p2334_p9 }
 0x330   : > { %p1434_p0 = por %p1433_p11, %p1432_p8 }
 0x331   : > { %p1430_p3 = pneg %p1429_p1 }
 0x332   : > { %p1436_p13 = por %p1435_p6, %p1434_p0 }
 0x334   : > { %p1437_p2 = pnand %p1436_p13, %p1430_p3 }
 0x336   : > { %1440 = shalt.err (!%p1437_p2)
}
 0x337   : > { %1181 = dma.vmem_to_hbm [thread:$0]  (%p2334_p9), %s2198_s7, 32, %s2196_s30, %s2200_s24  }
 0x338   : > { %s207_s8 = scalar_lea.vmem [#allocation7], %s1677_s23  ;;  %s2254_s4 = scalar_lea.hbm %s2304_s1, %s1166_s10 }
 0x339   : > { %s994_s6 = sshll.u32 %s207_s8, 4  ;;  %s973_s22 = scalar_lea.sflag [#allocation6], %s1677_s23  ;;  %s2247_s6 = int_to_ptr.vmem [resolvable:$true] %s994_s6 }
 0x33a   : > { %s1441_s28 = scalar_lea.vmem %s2247_s6, 16  ;;  %s1538_s7 = smov [#allocation7]  }
 0x33b   : > { %p1442_p5 = scmp.ne.s32.totalorder %s2247_s6, %s1441_s28  ;;  %s1445_s30 = sshll.u32 %s1538_s7, 4  ;;  %s1446_s30 = int_to_ptr.vmem [resolvable:$false] %s1445_s30 }
 0x33c   : > { %s1447_s24 = scalar_lea.vmem %s1446_s30, 32  ;;  %p1448_p10 = scmp.lt.s32.totalorder %s2247_s6, %s1446_s30 }
 0x33d   : > { %p1443_p4 = pnand %p1442_p5, %p2334_p9  ;;  %p1449_p12 = scmp.lt.s32.totalorder %s1447_s24, %s1441_s28 }
 0x33f   : > { %p1444_p7 = pneg %p1443_p4  ;;  %p1450_p1 = por %p1449_p12, %p1448_p10 }
 0x341   : > { %p1451_p3 = pnand %p1450_p1, %p1444_p7 }
 0x352   : > { %s1176_s11 = spop %1175 }
 0x353   : > { %v961_v24 = vstv %s1176_s11 }
 0x354   : > { %962 = vst [vmem:[%s207_s8] sm:$0x1] %v961_v24 }
 0x355   : > { %1454 = shalt.err (!%p1451_p3)
}
 0x356   : > { %s1455_s15 = scalar_lea.hbm %s2254_s4, 16  ;;  %s1459_s5 = scalar_lea.hbm %s2304_s1, 32 }
 0x357   : > { %p1456_p8 = scmp.ne.s32.totalorder %s2254_s4, %s1455_s15  ;;  %p1460_p6 = scmp.lt.u32.totalorder %s2254_s4, %s2304_s1 }
 0x358   : > { %p1461_p13 = scmp.lt.u32.totalorder %s1459_s5, %s1455_s15  ;;  %p1463_p5 = scmp.lt.u32.totalorder %s1455_s15, %s2254_s4 }
 0x359   : > { %p1457_p11 = pnand %p1456_p8, %p2334_p9 }
 0x35a   : > { %p1462_p2 = por %p1461_p13, %p1460_p6 }
 0x35b   : > { %p1458_p0 = pneg %p1457_p11 }
 0x35c   : > { %p1464_p4 = por %p1463_p5, %p1462_p2 }
 0x35e   : > { %p1465_p7 = pnand %p1464_p4, %p1458_p0 }
 0x360   : > { %1468 = shalt.err (!%p1465_p7)
}
 0x361   : > { %1179 = dma.vmem_to_hbm [thread:$0]  (%p2334_p9), %s2247_s6, 16, %s2254_s4, %s973_s22  }
 0x362 PF: > { %s1033_s8 = sand.u32 1, %s1507_s12   ;;  %p2335_p10 = scmp.ne.s32.totalorder %s2320_s27, 0 }
 0x363   : > { %p2336_p12 = scmp.ge.s32.totalorder %s1527_s17, 2  ;;  %s1034_s11 = scalar_lea.sflag [#allocation6], %s1033_s8 }
 0x365   : > { %p1190_p1 = pnand %p2336_p12, %p2335_p10 }
 0x367   : > { %1498 = dma.done.wait (!%p1190_p1), %s1034_s11, 16  }
 0x368   : > { %1500 = vsyncadd (!%p1190_p1), %s1034_s11, 4294967280  ;;  %s1041_s21 = sand.u32 1, %s1154_s19  }
 0x369   : > { %s1042_s9 = scalar_lea.sflag [#allocation9], %s1041_s21 }
 0x36a   : > { %1502 = dma.done.wait (!%p1190_p1), %s1042_s9, 48  }
 0x36b   : > { %1504 = vsyncadd (!%p1190_p1), %s1042_s9, 4294967248  ;;  %s23_s17 = sadd.s32 1, %s1527_s17   ;;  %s2337_s12 = smov %s1511_s13 }
 0x36c   : > { %p20_p9 = scmp.ge.s32.totalorder %s23_s17, 4   ;;  %s2338_s13 = smov %s1515_s14 }
 0x36d   : > { %s2339_s14 = smov %s1621_s26  ;;  %s2340_s15 = smov %s1523_s16 }
 0x36e   : > { %s2341_s16 = smov %s2343_s20  ;;  %22 = sbr.rel (!%p20_p9) target bundleno = 8 (0x8), region = 109 }
 0x375   :  { %1055 = vsyncpa [#allocation5], 1 }
 0x376   :  { %1057 = vsyncpa [#allocation5 + $0x1], 1 }
 0x377   :  { %1058 = vsyncpa [#allocation6], 1 }
 0x378   :  { %1060 = vsyncpa [#allocation6 + $0x1], 1 }
 0x379   :  { %1061 = vsyncpa [#allocation9], 1 }
 0x37a   :  { %1063 = vsyncpa [#allocation9 + $0x1], 1 }

</bundles_post_ra>
